<compile_context>
chip_gen: v7x
topology: tpu7x:2x2x1
jax: 0.10.0
libtpu: 0.0.40
codegen_flags: <defaults>
</compile_context>

<pallas_src>
import math

import jax
import jax.numpy as jnp
from jax import lax
from jax.experimental import pallas as pl
from jax.experimental.pallas import tpu as pltpu

# -------------------- model config (small, deterministic) --------------------
B = 2          # batch
L_SRC = 8      # source sequence length
L_TRG = 8      # target sequence length
D_MODEL = 32   # hidden size
N_HEADS = 2
D_HEAD = D_MODEL // N_HEADS
D_FF = 64
VOCAB = 16
GEN_PAD = 128  # generator output padded to a full 128-lane tile
N_LAYERS = 2
PAD_IDX = 1
LN_EPS = 1e-5
NEG_INF = -1e9

PACK_W = 128           # lane width of the packed bias/LN parameter block
ENC_PACK_ROWS = 8      # bqkv, bo, g1, b1, bf1, bf2, g2, b2
DEC_PACK_ROWS = 16     # 13 used rows, padded to a multiple of 8


# ---------------------- in-kernel helpers (traced inline) --------------------
def _layernorm(x, g, b):
    mu = jnp.mean(x, axis=-1, keepdims=True)
    var = jnp.mean((x - mu) ** 2, axis=-1, keepdims=True)
    return (x - mu) * lax.rsqrt(var + LN_EPS) * g + b


def _mha(q, k, v, bias, wo, bo):
    """Multi-head attention + output projection.

    q: (Lq, D), k/v: (Lk, D), bias: (Lq, Lk) additive (0 valid / -1e9 masked),
    wo: (D, D), bo: (1, D).  1/sqrt(d_head) is folded into the Q projection.
    Fully-masked query rows degrade to a uniform distribution over keys (same as
    the reference implementation); their outputs are garbage-but-ignored.
    """
    heads = []
    for h in range(N_HEADS):                         # static, fully unrolled
        sl = slice(h * D_HEAD, (h + 1) * D_HEAD)
        # q[:, sl] @ k[:, sl].T without materializing a transpose
        s = lax.dot_general(q[:, sl], k[:, sl],
                            dimension_numbers=(((1,), (1,)), ((), ())),
                            preferred_element_type=jnp.float32)
        s = s + bias                                  # mask hoisted out of head loop
        s = s - jnp.max(s, axis=-1, keepdims=True)
        p = jnp.exp(s)
        p = p * pl.reciprocal(jnp.sum(p, axis=-1, keepdims=True), approx=True)
        heads.append(jnp.dot(p, v[:, sl], preferred_element_type=jnp.float32))
    o = jnp.concatenate(heads, axis=-1)               # (Lq, D): free layout-wise
    return jnp.dot(o, wo, preferred_element_type=jnp.float32) + bo


# ------------------------------ fused stack kernels --------------------------
def _encoder_stack_kernel(x_ref, bias_ref,
                          wqkv_ref, wo_ref, w1_ref, w2_ref, bp_ref,
                          o_ref):
    """One grid step = one encoder layer for one batch element.

    The activation lives in o_ref (same output block across the layer axis), so
    no HBM roundtrip between layers.
    """
    l = pl.program_id(1)

    @pl.when(l == 0)
    def _():
        o_ref[0] = x_ref[0]                           # load embedded input once

    x = o_ref[0]                                      # (L, D)
    abias = bias_ref[0]                               # (L, L) additive
    bp = bp_ref[0]                                    # (8, 128) packed row params
    bqkv = bp[0:1, :3 * D_MODEL]
    bo = bp[1:2, :D_MODEL]
    g1 = bp[2:3, :D_MODEL]
    b1 = bp[3:4, :D_MODEL]
    bf1 = bp[4:5, :D_FF]
    bf2 = bp[5:6, :D_MODEL]
    g2 = bp[6:7, :D_MODEL]
    b2 = bp[7:8, :D_MODEL]

    # fused QKV projection (one (L,D)x(D,3D) matmul)
    qkv = jnp.dot(x, wqkv_ref[0], preferred_element_type=jnp.float32) + bqkv
    a = _mha(qkv[:, :D_MODEL], qkv[:, D_MODEL:2 * D_MODEL], qkv[:, 2 * D_MODEL:],
             abias, wo_ref[0], bo)
    x = _layernorm(x + a, g1, b1)

    # feed-forward + residual + layernorm, still in vregs
    h = jnp.maximum(
        jnp.dot(x, w1_ref[0], preferred_element_type=jnp.float32) + bf1, 0.0)
    f = jnp.dot(h, w2_ref[0], preferred_element_type=jnp.float32) + bf2
    x = _layernorm(x + f, g2, b2)
    o_ref[0] = x


def _decoder_stack_kernel(y_ref, enc_ref, sb_ref, cb_ref,
                          wqkv_ref, wos_ref, wq_ref, wkv_ref, woc_ref,
                          w1_ref, w2_ref, bp_ref, genw_ref, genb_ref,
                          dec_ref, logp_ref):
    """One grid step = one decoder layer for one batch element; generator runs
    on the last layer step (logits never leave VMEM)."""
    l = pl.program_id(1)

    @pl.when(l == 0)
    def _():
        dec_ref[0] = y_ref[0]

    x = dec_ref[0]                                    # (Lt, D)
    enc = enc_ref[0]                                  # (Ls, D)
    sbias = sb_ref[0]                                 # (Lt, Lt)
    cbias = cb_ref[0]                                 # (Lt, Ls)
    bp = bp_ref[0]                                    # (16, 128)
    bqkv = bp[0:1, :3 * D_MODEL]
    bo_s = bp[1:2, :D_MODEL]
    g1 = bp[2:3, :D_MODEL]
    b1 = bp[3:4, :D_MODEL]
    bq = bp[4:5, :D_MODEL]
    bkv = bp[5:6, :2 * D_MODEL]
    bo_c = bp[6:7, :D_MODEL]
    g2 = bp[7:8, :D_MODEL]
    b2 = bp[8:9, :D_MODEL]
    bf1 = bp[9:10, :D_FF]
    bf2 = bp[10:11, :D_MODEL]
    g3 = bp[11:12, :D_MODEL]
    b3 = bp[12:13, :D_MODEL]

    # masked self-attention (fused QKV)
    qkv = jnp.dot(x, wqkv_ref[0], preferred_element_type=jnp.float32) + bqkv
    a = _mha(qkv[:, :D_MODEL], qkv[:, D_MODEL:2 * D_MODEL], qkv[:, 2 * D_MODEL:],
             sbias, wos_ref[0], bo_s)
    x = _layernorm(x + a, g1, b1)

    # cross-attention: Q from decoder stream, fused KV from encoder output
    q = jnp.dot(x, wq_ref[0], preferred_element_type=jnp.float32) + bq
    kv = jnp.dot(enc, wkv_ref[0], preferred_element_type=jnp.float32) + bkv
    c = _mha(q, kv[:, :D_MODEL], kv[:, D_MODEL:], cbias, woc_ref[0], bo_c)
    x = _layernorm(x + c, g2, b2)

    # feed-forward
    h = jnp.maximum(
        jnp.dot(x, w1_ref[0], preferred_element_type=jnp.float32) + bf1, 0.0)
    f = jnp.dot(h, w2_ref[0], preferred_element_type=jnp.float32) + bf2
    x = _layernorm(x + f, g3, b3)
    dec_ref[0] = x

    # generator linear + log_softmax, only on the last layer step.  The weight is
    # lane-padded to 128; padded columns carry a -1e9 bias so they contribute
    # exp(...) == 0 to the log-sum-exp and the real columns are exact.
    @pl.when(l == pl.num_programs(1) - 1)
    def _():
        logits = (jnp.dot(x, genw_ref[...], preferred_element_type=jnp.float32)
                  + genb_ref[...])
        m = jnp.max(logits, axis=-1, keepdims=True)
        s = logits - m
        lse = jnp.log(jnp.sum(jnp.exp(s), axis=-1, keepdims=True))
        logp_ref[0] = s - lse


# ------------------------------ pallas_call wrappers --------------------------
def _per_batch3(shape):
    # per-batch block, constant across the layer axis (stays resident in VMEM)
    return pl.BlockSpec(shape, lambda b, l: (b, 0, 0))


def _per_layer3(shape):
    # per-layer weight block, constant across the batch axis
    return pl.BlockSpec(shape, lambda b, l: (l, 0, 0))


def _shared2(shape):
    # one block shared by every grid step
    return pl.BlockSpec(shape, lambda b, l: (0, 0))


def encoder_stack(x, src_bias, enc_p):
    Ls = x.shape[1]
    return pl.pallas_call(
        _encoder_stack_kernel,
        out_shape=jax.ShapeDtypeStruct((B, Ls, D_MODEL), jnp.float32),
        grid=(B, N_LAYERS),
        in_specs=[
            _per_batch3((1, Ls, D_MODEL)),                 # embedded src
            _per_batch3((1, Ls, Ls)),                      # additive src bias
            _per_layer3((1, D_MODEL, 3 * D_MODEL)),        # wqkv
            _per_layer3((1, D_MODEL, D_MODEL)),            # wo
            _per_layer3((1, D_MODEL, D_FF)),               # w1
            _per_layer3((1, D_FF, D_MODEL)),               # w2
            _per_layer3((1, ENC_PACK_ROWS, PACK_W)),       # packed biases / LN
        ],
        out_specs=_per_batch3((1, Ls, D_MODEL)),
        compiler_params=pltpu.CompilerParams(
            dimension_semantics=("parallel", "arbitrary")),
    )(x, src_bias,
      enc_p["wqkv"], enc_p["wo"], enc_p["w1"], enc_p["w2"], enc_p["pack"])


def decoder_stack(y, enc_out, trg_bias, st_bias, dec_p, gen_w, gen_b):
    Lt = y.shape[1]
    Ls = enc_out.shape[1]
    return pl.pallas_call(
        _decoder_stack_kernel,
        out_shape=(jax.ShapeDtypeStruct((B, Lt, D_MODEL), jnp.float32),
                   jax.ShapeDtypeStruct((B, Lt, GEN_PAD), jnp.float32)),
        grid=(B, N_LAYERS),
        in_specs=[
            _per_batch3((1, Lt, D_MODEL)),                 # embedded trg
            _per_batch3((1, Ls, D_MODEL)),                 # encoder output
            _per_batch3((1, Lt, Lt)),                      # self-attn bias
            _per_batch3((1, Lt, Ls)),                      # cross-attn bias
            _per_layer3((1, D_MODEL, 3 * D_MODEL)),        # self wqkv
            _per_layer3((1, D_MODEL, D_MODEL)),            # self wo
            _per_layer3((1, D_MODEL, D_MODEL)),            # cross wq
            _per_layer3((1, D_MODEL, 2 * D_MODEL)),        # cross wkv
            _per_layer3((1, D_MODEL, D_MODEL)),            # cross wo
            _per_layer3((1, D_MODEL, D_FF)),               # ffn w1
            _per_layer3((1, D_FF, D_MODEL)),               # ffn w2
            _per_layer3((1, DEC_PACK_ROWS, PACK_W)),       # packed biases / LN
            _shared2((D_MODEL, GEN_PAD)),                  # generator weight (padded)
            _shared2((1, GEN_PAD)),                        # generator bias  (padded)
        ],
        out_specs=(_per_batch3((1, Lt, D_MODEL)),
                   _per_batch3((1, Lt, GEN_PAD))),
        compiler_params=pltpu.CompilerParams(
            dimension_semantics=("parallel", "arbitrary")),
    )(y, enc_out, trg_bias, st_bias,
      dec_p["wqkv"], dec_p["wo_s"], dec_p["wq"], dec_p["wkv"], dec_p["wo_c"],
      dec_p["w1"], dec_p["w2"], dec_p["pack"], gen_w, gen_b)


# ------------------------------ glue (plain JAX) ------------------------------
def sinusoidal_pe(max_len, d_model):
    pos = jnp.arange(max_len, dtype=jnp.float32)[:, None]
    i = jnp.arange(0, d_model, 2, dtype=jnp.float32)[None, :]
    angle = pos / jnp.power(10000.0, i / d_model)
    pe = jnp.zeros((max_len, d_model), jnp.float32)
    pe = pe.at[:, 0::2].set(jnp.sin(angle))
    pe = pe.at[:, 1::2].set(jnp.cos(angle))
    return pe


def embed(ids, emb_table, pe):
    # token embedding lookup is glue (gather), scaled + positional encoding
    L = ids.shape[1]
    x = jnp.take(emb_table, ids, axis=0) * math.sqrt(D_MODEL)
    return x + pe[:L][None, :, :]


def make_attn_biases(src, trg):
    """Same semantics as Transformer.make_{src,trg,src_trg}_mask, but emitted
    directly as additive biases (0 keep / -1e9 masked) — no fragile >0.5 test."""
    sv = src != PAD_IDX                                   # (B, Ls)
    tv = trg != PAD_IDX                                   # (B, Lt)
    src_b = jnp.where(sv[:, None, :] & sv[:, :, None], 0.0, NEG_INF)
    causal = jnp.tril(jnp.ones((trg.shape[1], trg.shape[1]), dtype=bool))
    trg_b = jnp.where(tv[:, None, :] & tv[:, :, None] & causal[None], 0.0, NEG_INF)
    st_b = jnp.where(sv[:, None, :] & tv[:, :, None], 0.0, NEG_INF)
    return (src_b.astype(jnp.float32), trg_b.astype(jnp.float32),
            st_b.astype(jnp.float32))


# ----------------------------- parameter init ---------------------------------
def _init_linear(key, din, dout, scale=0.05):
    w = jax.random.normal(key, (din, dout), jnp.float32) * scale
    b = jnp.zeros((dout,), jnp.float32)
    return w, b


def _pack_rows(rows, n_rows):
    """Pack a list of 1-D row parameters into a lane-padded (n_rows, 128) block."""
    out = jnp.zeros((n_rows, PACK_W), jnp.float32)
    for i, r in enumerate(rows):
        out = out.at[i, : r.shape[0]].set(r)
    return out


def _init_encoder_layer(key):
    ks = jax.random.split(key, 6)
    scl = 1.0 / math.sqrt(D_HEAD)                     # fold attn scale into Q proj
    wq, bq = _init_linear(ks[0], D_MODEL, D_MODEL)
    wk, bk = _init_linear(ks[1], D_MODEL, D_MODEL)
    wv, bv = _init_linear(ks[2], D_MODEL, D_MODEL)
    wo, bo = _init_linear(ks[3], D_MODEL, D_MODEL)
    w1, bf1 = _init_linear(ks[4], D_MODEL, D_FF)
    w2, bf2 = _init_linear(ks[5], D_FF, D_MODEL)
    g1 = jnp.ones((D_MODEL,), jnp.float32); lb1 = jnp.zeros((D_MODEL,), jnp.float32)
    g2 = jnp.ones((D_MODEL,), jnp.float32); lb2 = jnp.zeros((D_MODEL,), jnp.float32)
    wqkv = jnp.concatenate([wq * scl, wk, wv], axis=1)
    bqkv = jnp.concatenate([bq * scl, bk, bv])
    pack = _pack_rows([bqkv, bo, g1, lb1, bf1, bf2, g2, lb2], ENC_PACK_ROWS)
    return dict(wqkv=wqkv, wo=wo, w1=w1, w2=w2, pack=pack)


def _init_decoder_layer(key):
    ks = jax.random.split(key, 10)
    scl = 1.0 / math.sqrt(D_HEAD)
    wq_s, bq_s = _init_linear(ks[0], D_MODEL, D_MODEL)
    wk_s, bk_s = _init_linear(ks[1], D_MODEL, D_MODEL)
    wv_s, bv_s = _init_linear(ks[2], D_MODEL, D_MODEL)
    wo_s, bo_s = _init_linear(ks[3], D_MODEL, D_MODEL)
    wq_c, bq_c = _init_linear(ks[4], D_MODEL, D_MODEL)
    wk_c, bk_c = _init_linear(ks[5], D_MODEL, D_MODEL)
    wv_c, bv_c = _init_linear(ks[6], D_MODEL, D_MODEL)
    wo_c, bo_c = _init_linear(ks[7], D_MODEL, D_MODEL)
    w1, bf1 = _init_linear(ks[8], D_MODEL, D_FF)
    w2, bf2 = _init_linear(ks[9], D_FF, D_MODEL)
    ones = lambda: jnp.ones((D_MODEL,), jnp.float32)
    zeros = lambda: jnp.zeros((D_MODEL,), jnp.float32)
    g1, lb1, g2, lb2, g3, lb3 = ones(), zeros(), ones(), zeros(), ones(), zeros()
    wqkv = jnp.concatenate([wq_s * scl, wk_s, wv_s], axis=1)
    bqkv = jnp.concatenate([bq_s * scl, bk_s, bv_s])
    wkv = jnp.concatenate([wk_c, wv_c], axis=1)
    bkv = jnp.concatenate([bk_c, bv_c])
    pack = _pack_rows([bqkv, bo_s, g1, lb1,
                       bq_c * scl, bkv, bo_c, g2, lb2,
                       bf1, bf2, g3, lb3], DEC_PACK_ROWS)
    return dict(wqkv=wqkv, wo_s=wo_s, wq=wq_c * scl, wkv=wkv, wo_c=wo_c,
                w1=w1, w2=w2, pack=pack)


def _stack(layer_dicts):
    return {k: jnp.stack([d[k] for d in layer_dicts]) for k in layer_dicts[0]}


def init_params(key):
    keys = jax.random.split(key, 3 + 2 * N_LAYERS)
    src_emb = jax.random.normal(keys[0], (VOCAB, D_MODEL), jnp.float32) * 0.05
    trg_emb = jax.random.normal(keys[1], (VOCAB, D_MODEL), jnp.float32) * 0.05
    pe = sinusoidal_pe(max(L_SRC, L_TRG), D_MODEL)

    enc_layers = [_init_encoder_layer(keys[3 + i]) for i in range(N_LAYERS)]
    dec_layers = [_init_decoder_layer(keys[3 + N_LAYERS + i]) for i in range(N_LAYERS)]

    gw, gb = _init_linear(keys[2], D_MODEL, VOCAB)
    # lane-pad the generator to 128: zero weight columns + -1e9 bias on padding
    gen_w = jnp.zeros((D_MODEL, GEN_PAD), jnp.float32).at[:, :VOCAB].set(gw)
    gen_b = jnp.full((1, GEN_PAD), NEG_INF, jnp.float32).at[:, :VOCAB].set(gb)

    return dict(src_emb=src_emb, trg_emb=trg_emb, pe=pe,
                encoder=_stack(enc_layers), decoder=_stack(dec_layers),
                gen_w=gen_w, gen_b=gen_b)


# --------------------------------- forward ------------------------------------
def transformer_forward(params, src, trg):
    # mask -> additive-bias construction (matches Transformer.make_*_mask)
    src_bias, trg_bias, st_bias = make_attn_biases(src, trg)

    # encoder: all layers in ONE pallas_call
    x = embed(src, params["src_emb"], params["pe"])
    encoder_out = encoder_stack(x, src_bias, params["encoder"])

    # decoder + generator: all layers plus log_softmax head in ONE pallas_call
    y = embed(trg, params["trg_emb"], params["pe"])
    decoder_out, logp_pad = decoder_stack(y, encoder_out, trg_bias, st_bias,
                                          params["decoder"],
                                          params["gen_w"], params["gen_b"])
    out = logp_pad[..., :VOCAB]        # drop the lane padding (glue slice)
    return out, decoder_out


# ----------------------------------- main --------------------------------------
if __name__ == "__main__":
    key = jax.random.PRNGKey(0)
    k_params, k_src, k_trg = jax.random.split(key, 3)

    params = init_params(k_params)
    src = jax.random.randint(k_src, (B, L_SRC), 0, VOCAB, dtype=jnp.int32)
    trg = jax.random.randint(k_trg, (B, L_TRG), 0, VOCAB, dtype=jnp.int32)

    out, decoder_out = jax.jit(transformer_forward)(params, src, trg)
    out = jax.block_until_ready(out)
    decoder_out = jax.block_until_ready(decoder_out)

    assert out.shape == (B, L_TRG, VOCAB)
    assert decoder_out.shape == (B, L_TRG, D_MODEL)
    # log_softmax rows should exponentiate to ~1
    assert bool(jnp.allclose(jnp.exp(out).sum(-1), 1.0, atol=1e-4))
    assert bool(jnp.all(jnp.isfinite(out)))
    print("KERNEL_OK")
</pallas_src>

<mosaic_0001>
module attributes {stable_mosaic.version = 11 : i64} {
  func.func @_encoder_stack_kernel(%arg0: i32, %arg1: i32, %arg2: memref<1x8x32xf32, #tpu.memory_space<vmem>>, %arg3: memref<1x8x8xf32, #tpu.memory_space<vmem>>, %arg4: memref<1x32x96xf32, #tpu.memory_space<vmem>>, %arg5: memref<1x32x32xf32, #tpu.memory_space<vmem>>, %arg6: memref<1x32x64xf32, #tpu.memory_space<vmem>>, %arg7: memref<1x64x32xf32, #tpu.memory_space<vmem>>, %arg8: memref<1x8x128xf32, #tpu.memory_space<vmem>>, %arg9: memref<1x8x32xf32, #tpu.memory_space<vmem>>) attributes {dimension_semantics = [#tpu.dimension_semantics<parallel>, #tpu.dimension_semantics<arbitrary>], iteration_bounds = array<i64: 2, 2>, scalar_prefetch = 0 : i64, scratch_operands = 0 : i64, tpu.core_type = #tpu.core_type<tc>, window_params = [{transform_indices = @transform_0, window_bounds = array<i64: 1, 8, 32>}, {transform_indices = @transform_1, window_bounds = array<i64: 1, 8, 8>}, {transform_indices = @transform_2, window_bounds = array<i64: 1, 32, 96>}, {transform_indices = @transform_3, window_bounds = array<i64: 1, 32, 32>}, {transform_indices = @transform_4, window_bounds = array<i64: 1, 32, 64>}, {transform_indices = @transform_5, window_bounds = array<i64: 1, 64, 32>}, {transform_indices = @transform_6, window_bounds = array<i64: 1, 8, 128>}, {transform_indices = @transform_7, window_bounds = array<i64: 1, 8, 32>}]} {
    %c0_i32 = arith.constant 0 : i32
    %0 = arith.cmpi eq, %arg1, %c0_i32 : i32
    %1 = arith.extui %0 : i1 to i32
    %c0_i32_0 = arith.constant 0 : i32
    %2 = arith.cmpi ne, %1, %c0_i32_0 : i32
    scf.if %2 {
      %c0_46 = arith.constant 0 : index
      %c0_47 = arith.constant 0 : index
      %c0_48 = arith.constant 0 : index
      %124 = vector.load %arg2[%c0_46, %c0_47, %c0_48] : memref<1x8x32xf32, #tpu.memory_space<vmem>>, vector<1x8x32xf32>
      %125 = vector.shape_cast %124 : vector<1x8x32xf32> to vector<8x32xf32>
      %c0_49 = arith.constant 0 : index
      %c0_50 = arith.constant 0 : index
      %c0_51 = arith.constant 0 : index
      %126 = vector.load %arg9[%c0_49, %c0_50, %c0_51] : memref<1x8x32xf32, #tpu.memory_space<vmem>>, vector<1x8x32xf32>
      %127 = vector.shape_cast %126 : vector<1x8x32xf32> to vector<8x32xf32>
      %128 = vector.shape_cast %125 : vector<8x32xf32> to vector<1x8x32xf32>
      tpu.vector_store %arg9[%c0_49, %c0_50, %c0_51], %128 {strides = array<i32>} : memref<1x8x32xf32, #tpu.memory_space<vmem>>, vector<1x8x32xf32>,
    } else {
    }
    %c0 = arith.constant 0 : index
    %c0_1 = arith.constant 0 : index
    %c0_2 = arith.constant 0 : index
    %3 = vector.load %arg9[%c0, %c0_1, %c0_2] : memref<1x8x32xf32, #tpu.memory_space<vmem>>, vector<1x8x32xf32>
    %4 = vector.shape_cast %3 : vector<1x8x32xf32> to vector<8x32xf32>
    %c0_3 = arith.constant 0 : index
    %c0_4 = arith.constant 0 : index
    %c0_5 = arith.constant 0 : index
    %5 = vector.load %arg3[%c0_3, %c0_4, %c0_5] : memref<1x8x8xf32, #tpu.memory_space<vmem>>, vector<1x8x8xf32>
    %6 = vector.shape_cast %5 : vector<1x8x8xf32> to vector<8x8xf32>
    %c0_6 = arith.constant 0 : index
    %c0_7 = arith.constant 0 : index
    %c0_8 = arith.constant 0 : index
    %7 = vector.load %arg8[%c0_6, %c0_7, %c0_8] : memref<1x8x128xf32, #tpu.memory_space<vmem>>, vector<1x8x128xf32>
    %8 = vector.shape_cast %7 : vector<1x8x128xf32> to vector<8x128xf32>
    %9 = vector.extract_strided_slice %8 {offsets = [0, 0], sizes = [1, 96], strides = [1, 1]} : vector<8x128xf32> to vector<1x96xf32>
    %10 = vector.extract_strided_slice %8 {offsets = [1, 0], sizes = [1, 32], strides = [1, 1]} : vector<8x128xf32> to vector<1x32xf32>
    %11 = vector.extract_strided_slice %8 {offsets = [2, 0], sizes = [1, 32], strides = [1, 1]} : vector<8x128xf32> to vector<1x32xf32>
    %12 = vector.extract_strided_slice %8 {offsets = [3, 0], sizes = [1, 32], strides = [1, 1]} : vector<8x128xf32> to vector<1x32xf32>
    %13 = vector.extract_strided_slice %8 {offsets = [4, 0], sizes = [1, 64], strides = [1, 1]} : vector<8x128xf32> to vector<1x64xf32>
    %14 = vector.extract_strided_slice %8 {offsets = [5, 0], sizes = [1, 32], strides = [1, 1]} : vector<8x128xf32> to vector<1x32xf32>
    %15 = vector.extract_strided_slice %8 {offsets = [6, 0], sizes = [1, 32], strides = [1, 1]} : vector<8x128xf32> to vector<1x32xf32>
    %16 = vector.extract_strided_slice %8 {offsets = [7, 0], sizes = [1, 32], strides = [1, 1]} : vector<8x128xf32> to vector<1x32xf32>
    %c0_9 = arith.constant 0 : index
    %c0_10 = arith.constant 0 : index
    %c0_11 = arith.constant 0 : index
    %17 = vector.load %arg4[%c0_9, %c0_10, %c0_11] : memref<1x32x96xf32, #tpu.memory_space<vmem>>, vector<1x32x96xf32>
    %18 = vector.shape_cast %17 : vector<1x32x96xf32> to vector<32x96xf32>
    %cst = arith.constant dense<0.000000e+00> : vector<8x96xf32>
    %19 = tpu.matmul %4, %18, %cst {dimension_numbers = #tpu.dot_dimension_numbers<[1], [0], [0], [1], [0, 0, 1, 1], [], []>} : vector<8x32xf32>, vector<32x96xf32>, vector<8x96xf32> -> vector<8x96xf32>
    %20 = vector.broadcast %9 : vector<1x96xf32> to vector<8x96xf32>
    %21 = arith.addf %19, %20 : vector<8x96xf32>
    %22 = vector.extract_strided_slice %21 {offsets = [0, 0], sizes = [8, 32], strides = [1, 1]} : vector<8x96xf32> to vector<8x32xf32>
    %23 = vector.extract_strided_slice %21 {offsets = [0, 32], sizes = [8, 32], strides = [1, 1]} : vector<8x96xf32> to vector<8x32xf32>
    %24 = vector.extract_strided_slice %21 {offsets = [0, 64], sizes = [8, 32], strides = [1, 1]} : vector<8x96xf32> to vector<8x32xf32>
    %c0_12 = arith.constant 0 : index
    %c0_13 = arith.constant 0 : index
    %c0_14 = arith.constant 0 : index
    %25 = vector.load %arg5[%c0_12, %c0_13, %c0_14] : memref<1x32x32xf32, #tpu.memory_space<vmem>>, vector<1x32x32xf32>
    %26 = vector.shape_cast %25 : vector<1x32x32xf32> to vector<32x32xf32>
    %27 = vector.extract_strided_slice %22 {offsets = [0, 0], sizes = [8, 16], strides = [1, 1]} : vector<8x32xf32> to vector<8x16xf32>
    %28 = vector.extract_strided_slice %23 {offsets = [0, 0], sizes = [8, 16], strides = [1, 1]} : vector<8x32xf32> to vector<8x16xf32>
    %cst_15 = arith.constant dense<0.000000e+00> : vector<8x8xf32>
    %29 = tpu.matmul %27, %28, %cst_15 {dimension_numbers = #tpu.dot_dimension_numbers<[1], [1], [0], [0], [0, 0, 1, 0], [], []>} : vector<8x16xf32>, vector<8x16xf32>, vector<8x8xf32> -> vector<8x8xf32>
    %30 = arith.addf %29, %6 : vector<8x8xf32>
    %cst_16 = arith.constant dense<0xFF800000> : vector<8xf32>
    %31 = vector.multi_reduction <maximumf>, %30, %cst_16 [1] : vector<8x8xf32> to vector<8xf32>
    %32 = vector.shape_cast %31 : vector<8xf32> to vector<8x1xf32>
    %33 = vector.broadcast %32 : vector<8x1xf32> to vector<8x8xf32>
    %34 = arith.subf %30, %33 : vector<8x8xf32>
    %35 = math.exp %34 : vector<8x8xf32>
    %cst_17 = arith.constant dense<0.000000e+00> : vector<8xf32>
    %36 = vector.multi_reduction <add>, %35, %cst_17 [1] : vector<8x8xf32> to vector<8xf32>
    %37 = vector.shape_cast %36 : vector<8xf32> to vector<8x1xf32>
    %38 = tpu.reciprocal %37 {approx = true} : vector<8x1xf32> -> vector<8x1xf32>
    %39 = vector.broadcast %38 : vector<8x1xf32> to vector<8x8xf32>
    %40 = arith.mulf %35, %39 : vector<8x8xf32>
    %41 = vector.extract_strided_slice %24 {offsets = [0, 0], sizes = [8, 16], strides = [1, 1]} : vector<8x32xf32> to vector<8x16xf32>
    %cst_18 = arith.constant dense<0.000000e+00> : vector<8x16xf32>
    %42 = tpu.matmul %40, %41, %cst_18 {dimension_numbers = #tpu.dot_dimension_numbers<[1], [0], [0], [1], [0, 0, 1, 1], [], []>} : vector<8x8xf32>, vector<8x16xf32>, vector<8x16xf32> -> vector<8x16xf32>
    %43 = vector.extract_strided_slice %22 {offsets = [0, 16], sizes = [8, 16], strides = [1, 1]} : vector<8x32xf32> to vector<8x16xf32>
    %44 = vector.extract_strided_slice %23 {offsets = [0, 16], sizes = [8, 16], strides = [1, 1]} : vector<8x32xf32> to vector<8x16xf32>
    %cst_19 = arith.constant dense<0.000000e+00> : vector<8x8xf32>
    %45 = tpu.matmul %43, %44, %cst_19 {dimension_numbers = #tpu.dot_dimension_numbers<[1], [1], [0], [0], [0, 0, 1, 0], [], []>} : vector<8x16xf32>, vector<8x16xf32>, vector<8x8xf32> -> vector<8x8xf32>
    %46 = arith.addf %45, %6 : vector<8x8xf32>
    %cst_20 = arith.constant dense<0xFF800000> : vector<8xf32>
    %47 = vector.multi_reduction <maximumf>, %46, %cst_20 [1] : vector<8x8xf32> to vector<8xf32>
    %48 = vector.shape_cast %47 : vector<8xf32> to vector<8x1xf32>
    %49 = vector.broadcast %48 : vector<8x1xf32> to vector<8x8xf32>
    %50 = arith.subf %46, %49 : vector<8x8xf32>
    %51 = math.exp %50 : vector<8x8xf32>
    %cst_21 = arith.constant dense<0.000000e+00> : vector<8xf32>
    %52 = vector.multi_reduction <add>, %51, %cst_21 [1] : vector<8x8xf32> to vector<8xf32>
    %53 = vector.shape_cast %52 : vector<8xf32> to vector<8x1xf32>
    %54 = tpu.reciprocal %53 {approx = true} : vector<8x1xf32> -> vector<8x1xf32>
    %55 = vector.broadcast %54 : vector<8x1xf32> to vector<8x8xf32>
    %56 = arith.mulf %51, %55 : vector<8x8xf32>
    %57 = vector.extract_strided_slice %24 {offsets = [0, 16], sizes = [8, 16], strides = [1, 1]} : vector<8x32xf32> to vector<8x16xf32>
    %cst_22 = arith.constant dense<0.000000e+00> : vector<8x16xf32>
    %58 = tpu.matmul %56, %57, %cst_22 {dimension_numbers = #tpu.dot_dimension_numbers<[1], [0], [0], [1], [0, 0, 1, 1], [], []>} : vector<8x8xf32>, vector<8x16xf32>, vector<8x16xf32> -> vector<8x16xf32>
    %59 = tpu.concatenate %42, %58 in 1 : vector<8x16xf32>, vector<8x16xf32> -> vector<8x32xf32>
    %cst_23 = arith.constant dense<0.000000e+00> : vector<8x32xf32>
    %60 = tpu.matmul %59, %26, %cst_23 {dimension_numbers = #tpu.dot_dimension_numbers<[1], [0], [0], [1], [0, 0, 1, 1], [], []>} : vector<8x32xf32>, vector<32x32xf32>, vector<8x32xf32> -> vector<8x32xf32>
    %61 = vector.broadcast %10 : vector<1x32xf32> to vector<8x32xf32>
    %62 = arith.addf %60, %61 : vector<8x32xf32>
    %63 = arith.addf %4, %62 : vector<8x32xf32>
    %cst_24 = arith.constant dense<0.000000e+00> : vector<8xf32>
    %64 = vector.multi_reduction <add>, %63, %cst_24 [1] : vector<8x32xf32> to vector<8xf32>
    %65 = vector.shape_cast %64 : vector<8xf32> to vector<8x1xf32>
    %cst_25 = arith.constant 3.200000e+01 : f32
    %66 = vector.broadcast %cst_25 : f32 to vector<8x1xf32>
    %67 = arith.divf %65, %66 : vector<8x1xf32>
    %68 = vector.broadcast %67 : vector<8x1xf32> to vector<8x32xf32>
    %69 = arith.subf %63, %68 : vector<8x32xf32>
    %70 = arith.mulf %69, %69 : vector<8x32xf32>
    %cst_26 = arith.constant dense<0.000000e+00> : vector<8xf32>
    %71 = vector.multi_reduction <add>, %70, %cst_26 [1] : vector<8x32xf32> to vector<8xf32>
    %72 = vector.shape_cast %71 : vector<8xf32> to vector<8x1xf32>
    %cst_27 = arith.constant 3.200000e+01 : f32
    %73 = vector.broadcast %cst_27 : f32 to vector<8x1xf32>
    %74 = arith.divf %72, %73 : vector<8x1xf32>
    %75 = vector.broadcast %67 : vector<8x1xf32> to vector<8x32xf32>
    %76 = arith.subf %63, %75 : vector<8x32xf32>
    %cst_28 = arith.constant 9.99999974E-6 : f32
    %77 = vector.broadcast %cst_28 : f32 to vector<8x1xf32>
    %78 = arith.addf %74, %77 : vector<8x1xf32>
    %79 = math.rsqrt %78 : vector<8x1xf32>
    %80 = vector.broadcast %79 : vector<8x1xf32> to vector<8x32xf32>
    %81 = arith.mulf %76, %80 : vector<8x32xf32>
    %82 = vector.broadcast %11 : vector<1x32xf32> to vector<8x32xf32>
    %83 = arith.mulf %81, %82 : vector<8x32xf32>
    %84 = vector.broadcast %12 : vector<1x32xf32> to vector<8x32xf32>
    %85 = arith.addf %83, %84 : vector<8x32xf32>
    %c0_29 = arith.constant 0 : index
    %c0_30 = arith.constant 0 : index
    %c0_31 = arith.constant 0 : index
    %86 = vector.load %arg6[%c0_29, %c0_30, %c0_31] : memref<1x32x64xf32, #tpu.memory_space<vmem>>, vector<1x32x64xf32>
    %87 = vector.shape_cast %86 : vector<1x32x64xf32> to vector<32x64xf32>
    %cst_32 = arith.constant dense<0.000000e+00> : vector<8x64xf32>
    %88 = tpu.matmul %85, %87, %cst_32 {dimension_numbers = #tpu.dot_dimension_numbers<[1], [0], [0], [1], [0, 0, 1, 1], [], []>} : vector<8x32xf32>, vector<32x64xf32>, vector<8x64xf32> -> vector<8x64xf32>
    %89 = vector.broadcast %13 : vector<1x64xf32> to vector<8x64xf32>
    %90 = arith.addf %88, %89 : vector<8x64xf32>
    %cst_33 = arith.constant 0.000000e+00 : f32
    %91 = vector.broadcast %cst_33 : f32 to vector<8x64xf32>
    %92 = arith.maximumf %90, %91 : vector<8x64xf32>
    %c0_34 = arith.constant 0 : index
    %c0_35 = arith.constant 0 : index
    %c0_36 = arith.constant 0 : index
    %93 = vector.load %arg7[%c0_34, %c0_35, %c0_36] : memref<1x64x32xf32, #tpu.memory_space<vmem>>, vector<1x64x32xf32>
    %94 = vector.shape_cast %93 : vector<1x64x32xf32> to vector<64x32xf32>
    %cst_37 = arith.constant dense<0.000000e+00> : vector<8x32xf32>
    %95 = tpu.matmul %92, %94, %cst_37 {dimension_numbers = #tpu.dot_dimension_numbers<[1], [0], [0], [1], [0, 0, 1, 1], [], []>} : vector<8x64xf32>, vector<64x32xf32>, vector<8x32xf32> -> vector<8x32xf32>
    %96 = vector.broadcast %14 : vector<1x32xf32> to vector<8x32xf32>
    %97 = arith.addf %95, %96 : vector<8x32xf32>
    %98 = arith.addf %85, %97 : vector<8x32xf32>
    %cst_38 = arith.constant dense<0.000000e+00> : vector<8xf32>
    %99 = vector.multi_reduction <add>, %98, %cst_38 [1] : vector<8x32xf32> to vector<8xf32>
    %100 = vector.shape_cast %99 : vector<8xf32> to vector<8x1xf32>
    %cst_39 = arith.constant 3.200000e+01 : f32
    %101 = vector.broadcast %cst_39 : f32 to vector<8x1xf32>
    %102 = arith.divf %100, %101 : vector<8x1xf32>
    %103 = vector.broadcast %102 : vector<8x1xf32> to vector<8x32xf32>
    %104 = arith.subf %98, %103 : vector<8x32xf32>
    %105 = arith.mulf %104, %104 : vector<8x32xf32>
    %cst_40 = arith.constant dense<0.000000e+00> : vector<8xf32>
    %106 = vector.multi_reduction <add>, %105, %cst_40 [1] : vector<8x32xf32> to vector<8xf32>
    %107 = vector.shape_cast %106 : vector<8xf32> to vector<8x1xf32>
    %cst_41 = arith.constant 3.200000e+01 : f32
    %108 = vector.broadcast %cst_41 : f32 to vector<8x1xf32>
    %109 = arith.divf %107, %108 : vector<8x1xf32>
    %110 = vector.broadcast %102 : vector<8x1xf32> to vector<8x32xf32>
    %111 = arith.subf %98, %110 : vector<8x32xf32>
    %cst_42 = arith.constant 9.99999974E-6 : f32
    %112 = vector.broadcast %cst_42 : f32 to vector<8x1xf32>
    %113 = arith.addf %109, %112 : vector<8x1xf32>
    %114 = math.rsqrt %113 : vector<8x1xf32>
    %115 = vector.broadcast %114 : vector<8x1xf32> to vector<8x32xf32>
    %116 = arith.mulf %111, %115 : vector<8x32xf32>
    %117 = vector.broadcast %15 : vector<1x32xf32> to vector<8x32xf32>
    %118 = arith.mulf %116, %117 : vector<8x32xf32>
    %119 = vector.broadcast %16 : vector<1x32xf32> to vector<8x32xf32>
    %120 = arith.addf %118, %119 : vector<8x32xf32>
    %c0_43 = arith.constant 0 : index
    %c0_44 = arith.constant 0 : index
    %c0_45 = arith.constant 0 : index
    %121 = vector.load %arg9[%c0_43, %c0_44, %c0_45] : memref<1x8x32xf32, #tpu.memory_space<vmem>>, vector<1x8x32xf32>
    %122 = vector.shape_cast %121 : vector<1x8x32xf32> to vector<8x32xf32>
    %123 = vector.shape_cast %120 : vector<8x32xf32> to vector<1x8x32xf32>
    tpu.vector_store %arg9[%c0_43, %c0_44, %c0_45], %123 {strides = array<i32>} : memref<1x8x32xf32, #tpu.memory_space<vmem>>, vector<1x8x32xf32>,
    return
  }
  func.func @transform_0(%arg0: i32, %arg1: i32) -> (i32, i32, i32) {
    %c0_i32 = arith.constant 0 : i32
    %c0_i32_0 = arith.constant 0 : i32
    %c0_i32_1 = arith.constant 0 : i32
    return %arg0, %c0_i32, %c0_i32_0 : i32, i32, i32
  }
  func.func @transform_1(%arg0: i32, %arg1: i32) -> (i32, i32, i32) {
    %c0_i32 = arith.constant 0 : i32
    %c0_i32_0 = arith.constant 0 : i32
    %c0_i32_1 = arith.constant 0 : i32
    return %arg0, %c0_i32, %c0_i32_0 : i32, i32, i32
  }
  func.func @transform_2(%arg0: i32, %arg1: i32) -> (i32, i32, i32) {
    %c0_i32 = arith.constant 0 : i32
    %c0_i32_0 = arith.constant 0 : i32
    %c0_i32_1 = arith.constant 0 : i32
    return %arg1, %c0_i32, %c0_i32_0 : i32, i32, i32
  }
  func.func @transform_3(%arg0: i32, %arg1: i32) -> (i32, i32, i32) {
    %c0_i32 = arith.constant 0 : i32
    %c0_i32_0 = arith.constant 0 : i32
    %c0_i32_1 = arith.constant 0 : i32
    return %arg1, %c0_i32, %c0_i32_0 : i32, i32, i32
  }
  func.func @transform_4(%arg0: i32, %arg1: i32) -> (i32, i32, i32) {
    %c0_i32 = arith.constant 0 : i32
    %c0_i32_0 = arith.constant 0 : i32
    %c0_i32_1 = arith.constant 0 : i32
    return %arg1, %c0_i32, %c0_i32_0 : i32, i32, i32
  }
  func.func @transform_5(%arg0: i32, %arg1: i32) -> (i32, i32, i32) {
    %c0_i32 = arith.constant 0 : i32
    %c0_i32_0 = arith.constant 0 : i32
    %c0_i32_1 = arith.constant 0 : i32
    return %arg1, %c0_i32, %c0_i32_0 : i32, i32, i32
  }
  func.func @transform_6(%arg0: i32, %arg1: i32) -> (i32, i32, i32) {
    %c0_i32 = arith.constant 0 : i32
    %c0_i32_0 = arith.constant 0 : i32
    %c0_i32_1 = arith.constant 0 : i32
    return %arg1, %c0_i32, %c0_i32_0 : i32, i32, i32
  }
  func.func @transform_7(%arg0: i32, %arg1: i32) -> (i32, i32, i32) {
    %c0_i32 = arith.constant 0 : i32
    %c0_i32_0 = arith.constant 0 : i32
    %c0_i32_1 = arith.constant 0 : i32
    return %arg0, %c0_i32, %c0_i32_0 : i32, i32, i32
  }
}

module attributes {stable_mosaic.version = 11 : i64} {
  func.func @_decoder_stack_kernel(%arg0: i32, %arg1: i32, %arg2: memref<1x8x32xf32, #tpu.memory_space<vmem>>, %arg3: memref<1x8x32xf32, #tpu.memory_space<vmem>>, %arg4: memref<1x8x8xf32, #tpu.memory_space<vmem>>, %arg5: memref<1x8x8xf32, #tpu.memory_space<vmem>>, %arg6: memref<1x32x96xf32, #tpu.memory_space<vmem>>, %arg7: memref<1x32x32xf32, #tpu.memory_space<vmem>>, %arg8: memref<1x32x32xf32, #tpu.memory_space<vmem>>, %arg9: memref<1x32x64xf32, #tpu.memory_space<vmem>>, %arg10: memref<1x32x32xf32, #tpu.memory_space<vmem>>, %arg11: memref<1x32x64xf32, #tpu.memory_space<vmem>>, %arg12: memref<1x64x32xf32, #tpu.memory_space<vmem>>, %arg13: memref<1x16x128xf32, #tpu.memory_space<vmem>>, %arg14: memref<32x128xf32, #tpu.memory_space<vmem>>, %arg15: memref<1x128xf32, #tpu.memory_space<vmem>>, %arg16: memref<1x8x32xf32, #tpu.memory_space<vmem>>, %arg17: memref<1x8x128xf32, #tpu.memory_space<vmem>>) attributes {dimension_semantics = [#tpu.dimension_semantics<parallel>, #tpu.dimension_semantics<arbitrary>], iteration_bounds = array<i64: 2, 2>, scalar_prefetch = 0 : i64, scratch_operands = 0 : i64, tpu.core_type = #tpu.core_type<tc>, window_params = [{transform_indices = @transform_0, window_bounds = array<i64: 1, 8, 32>}, {transform_indices = @transform_1, window_bounds = array<i64: 1, 8, 32>}, {transform_indices = @transform_2, window_bounds = array<i64: 1, 8, 8>}, {transform_indices = @transform_3, window_bounds = array<i64: 1, 8, 8>}, {transform_indices = @transform_4, window_bounds = array<i64: 1, 32, 96>}, {transform_indices = @transform_5, window_bounds = array<i64: 1, 32, 32>}, {transform_indices = @transform_6, window_bounds = array<i64: 1, 32, 32>}, {transform_indices = @transform_7, window_bounds = array<i64: 1, 32, 64>}, {transform_indices = @transform_8, window_bounds = array<i64: 1, 32, 32>}, {transform_indices = @transform_9, window_bounds = array<i64: 1, 32, 64>}, {transform_indices = @transform_10, window_bounds = array<i64: 1, 64, 32>}, {transform_indices = @transform_11, window_bounds = array<i64: 1, 16, 128>}, {pipeline_mode = #tpu.pipeline_mode<synchronous>, transform_indices = @transform_12, window_bounds = array<i64: 32, 128>}, {pipeline_mode = #tpu.pipeline_mode<synchronous>, transform_indices = @transform_13, window_bounds = array<i64: 1, 128>}, {transform_indices = @transform_14, window_bounds = array<i64: 1, 8, 32>}, {transform_indices = @transform_15, window_bounds = array<i64: 1, 8, 128>}]} {
    %c0_i32 = arith.constant 0 : i32
    %0 = arith.cmpi eq, %arg1, %c0_i32 : i32
    %1 = arith.extui %0 : i1 to i32
    %c0_i32_0 = arith.constant 0 : i32
    %2 = arith.cmpi ne, %1, %c0_i32_0 : i32
    scf.if %2 {
      %c0_78 = arith.constant 0 : index
      %c0_79 = arith.constant 0 : index
      %c0_80 = arith.constant 0 : index
      %209 = vector.load %arg2[%c0_78, %c0_79, %c0_80] : memref<1x8x32xf32, #tpu.memory_space<vmem>>, vector<1x8x32xf32>
      %210 = vector.shape_cast %209 : vector<1x8x32xf32> to vector<8x32xf32>
      %c0_81 = arith.constant 0 : index
      %c0_82 = arith.constant 0 : index
      %c0_83 = arith.constant 0 : index
      %211 = vector.load %arg16[%c0_81, %c0_82, %c0_83] : memref<1x8x32xf32, #tpu.memory_space<vmem>>, vector<1x8x32xf32>
      %212 = vector.shape_cast %211 : vector<1x8x32xf32> to vector<8x32xf32>
      %213 = vector.shape_cast %210 : vector<8x32xf32> to vector<1x8x32xf32>
      tpu.vector_store %arg16[%c0_81, %c0_82, %c0_83], %213 {strides = array<i32>} : memref<1x8x32xf32, #tpu.memory_space<vmem>>, vector<1x8x32xf32>,
    } else {
    }
    %c0 = arith.constant 0 : index
    %c0_1 = arith.constant 0 : index
    %c0_2 = arith.constant 0 : index
    %3 = vector.load %arg16[%c0, %c0_1, %c0_2] : memref<1x8x32xf32, #tpu.memory_space<vmem>>, vector<1x8x32xf32>
    %4 = vector.shape_cast %3 : vector<1x8x32xf32> to vector<8x32xf32>
    %c0_3 = arith.constant 0 : index
    %c0_4 = arith.constant 0 : index
    %c0_5 = arith.constant 0 : index
    %5 = vector.load %arg3[%c0_3, %c0_4, %c0_5] : memref<1x8x32xf32, #tpu.memory_space<vmem>>, vector<1x8x32xf32>
    %6 = vector.shape_cast %5 : vector<1x8x32xf32> to vector<8x32xf32>
    %c0_6 = arith.constant 0 : index
    %c0_7 = arith.constant 0 : index
    %c0_8 = arith.constant 0 : index
    %7 = vector.load %arg4[%c0_6, %c0_7, %c0_8] : memref<1x8x8xf32, #tpu.memory_space<vmem>>, vector<1x8x8xf32>
    %8 = vector.shape_cast %7 : vector<1x8x8xf32> to vector<8x8xf32>
    %c0_9 = arith.constant 0 : index
    %c0_10 = arith.constant 0 : index
    %c0_11 = arith.constant 0 : index
    %9 = vector.load %arg5[%c0_9, %c0_10, %c0_11] : memref<1x8x8xf32, #tpu.memory_space<vmem>>, vector<1x8x8xf32>
    %10 = vector.shape_cast %9 : vector<1x8x8xf32> to vector<8x8xf32>
    %c0_12 = arith.constant 0 : index
    %c0_13 = arith.constant 0 : index
    %c0_14 = arith.constant 0 : index
    %11 = vector.load %arg13[%c0_12, %c0_13, %c0_14] : memref<1x16x128xf32, #tpu.memory_space<vmem>>, vector<1x16x128xf32>
    %12 = vector.shape_cast %11 : vector<1x16x128xf32> to vector<16x128xf32>
    %13 = vector.extract_strided_slice %12 {offsets = [0, 0], sizes = [1, 96], strides = [1, 1]} : vector<16x128xf32> to vector<1x96xf32>
    %14 = vector.extract_strided_slice %12 {offsets = [1, 0], sizes = [1, 32], strides = [1, 1]} : vector<16x128xf32> to vector<1x32xf32>
    %15 = vector.extract_strided_slice %12 {offsets = [2, 0], sizes = [1, 32], strides = [1, 1]} : vector<16x128xf32> to vector<1x32xf32>
    %16 = vector.extract_strided_slice %12 {offsets = [3, 0], sizes = [1, 32], strides = [1, 1]} : vector<16x128xf32> to vector<1x32xf32>
    %17 = vector.extract_strided_slice %12 {offsets = [4, 0], sizes = [1, 32], strides = [1, 1]} : vector<16x128xf32> to vector<1x32xf32>
    %18 = vector.extract_strided_slice %12 {offsets = [5, 0], sizes = [1, 64], strides = [1, 1]} : vector<16x128xf32> to vector<1x64xf32>
    %19 = vector.extract_strided_slice %12 {offsets = [6, 0], sizes = [1, 32], strides = [1, 1]} : vector<16x128xf32> to vector<1x32xf32>
    %20 = vector.extract_strided_slice %12 {offsets = [7, 0], sizes = [1, 32], strides = [1, 1]} : vector<16x128xf32> to vector<1x32xf32>
    %21 = vector.extract_strided_slice %12 {offsets = [8, 0], sizes = [1, 32], strides = [1, 1]} : vector<16x128xf32> to vector<1x32xf32>
    %22 = vector.extract_strided_slice %12 {offsets = [9, 0], sizes = [1, 64], strides = [1, 1]} : vector<16x128xf32> to vector<1x64xf32>
    %23 = vector.extract_strided_slice %12 {offsets = [10, 0], sizes = [1, 32], strides = [1, 1]} : vector<16x128xf32> to vector<1x32xf32>
    %24 = vector.extract_strided_slice %12 {offsets = [11, 0], sizes = [1, 32], strides = [1, 1]} : vector<16x128xf32> to vector<1x32xf32>
    %25 = vector.extract_strided_slice %12 {offsets = [12, 0], sizes = [1, 32], strides = [1, 1]} : vector<16x128xf32> to vector<1x32xf32>
    %c0_15 = arith.constant 0 : index
    %c0_16 = arith.constant 0 : index
    %c0_17 = arith.constant 0 : index
    %26 = vector.load %arg6[%c0_15, %c0_16, %c0_17] : memref<1x32x96xf32, #tpu.memory_space<vmem>>, vector<1x32x96xf32>
    %27 = vector.shape_cast %26 : vector<1x32x96xf32> to vector<32x96xf32>
    %cst = arith.constant dense<0.000000e+00> : vector<8x96xf32>
    %28 = tpu.matmul %4, %27, %cst {dimension_numbers = #tpu.dot_dimension_numbers<[1], [0], [0], [1], [0, 0, 1, 1], [], []>} : vector<8x32xf32>, vector<32x96xf32>, vector<8x96xf32> -> vector<8x96xf32>
    %29 = vector.broadcast %13 : vector<1x96xf32> to vector<8x96xf32>
    %30 = arith.addf %28, %29 : vector<8x96xf32>
    %31 = vector.extract_strided_slice %30 {offsets = [0, 0], sizes = [8, 32], strides = [1, 1]} : vector<8x96xf32> to vector<8x32xf32>
    %32 = vector.extract_strided_slice %30 {offsets = [0, 32], sizes = [8, 32], strides = [1, 1]} : vector<8x96xf32> to vector<8x32xf32>
    %33 = vector.extract_strided_slice %30 {offsets = [0, 64], sizes = [8, 32], strides = [1, 1]} : vector<8x96xf32> to vector<8x32xf32>
    %c0_18 = arith.constant 0 : index
    %c0_19 = arith.constant 0 : index
    %c0_20 = arith.constant 0 : index
    %34 = vector.load %arg7[%c0_18, %c0_19, %c0_20] : memref<1x32x32xf32, #tpu.memory_space<vmem>>, vector<1x32x32xf32>
    %35 = vector.shape_cast %34 : vector<1x32x32xf32> to vector<32x32xf32>
    %36 = vector.extract_strided_slice %31 {offsets = [0, 0], sizes = [8, 16], strides = [1, 1]} : vector<8x32xf32> to vector<8x16xf32>
    %37 = vector.extract_strided_slice %32 {offsets = [0, 0], sizes = [8, 16], strides = [1, 1]} : vector<8x32xf32> to vector<8x16xf32>
    %cst_21 = arith.constant dense<0.000000e+00> : vector<8x8xf32>
    %38 = tpu.matmul %36, %37, %cst_21 {dimension_numbers = #tpu.dot_dimension_numbers<[1], [1], [0], [0], [0, 0, 1, 0], [], []>} : vector<8x16xf32>, vector<8x16xf32>, vector<8x8xf32> -> vector<8x8xf32>
    %39 = arith.addf %38, %8 : vector<8x8xf32>
    %cst_22 = arith.constant dense<0xFF800000> : vector<8xf32>
    %40 = vector.multi_reduction <maximumf>, %39, %cst_22 [1] : vector<8x8xf32> to vector<8xf32>
    %41 = vector.shape_cast %40 : vector<8xf32> to vector<8x1xf32>
    %42 = vector.broadcast %41 : vector<8x1xf32> to vector<8x8xf32>
    %43 = arith.subf %39, %42 : vector<8x8xf32>
    %44 = math.exp %43 : vector<8x8xf32>
    %cst_23 = arith.constant dense<0.000000e+00> : vector<8xf32>
    %45 = vector.multi_reduction <add>, %44, %cst_23 [1] : vector<8x8xf32> to vector<8xf32>
    %46 = vector.shape_cast %45 : vector<8xf32> to vector<8x1xf32>
    %47 = tpu.reciprocal %46 {approx = true} : vector<8x1xf32> -> vector<8x1xf32>
    %48 = vector.broadcast %47 : vector<8x1xf32> to vector<8x8xf32>
    %49 = arith.mulf %44, %48 : vector<8x8xf32>
    %50 = vector.extract_strided_slice %33 {offsets = [0, 0], sizes = [8, 16], strides = [1, 1]} : vector<8x32xf32> to vector<8x16xf32>
    %cst_24 = arith.constant dense<0.000000e+00> : vector<8x16xf32>
    %51 = tpu.matmul %49, %50, %cst_24 {dimension_numbers = #tpu.dot_dimension_numbers<[1], [0], [0], [1], [0, 0, 1, 1], [], []>} : vector<8x8xf32>, vector<8x16xf32>, vector<8x16xf32> -> vector<8x16xf32>
    %52 = vector.extract_strided_slice %31 {offsets = [0, 16], sizes = [8, 16], strides = [1, 1]} : vector<8x32xf32> to vector<8x16xf32>
    %53 = vector.extract_strided_slice %32 {offsets = [0, 16], sizes = [8, 16], strides = [1, 1]} : vector<8x32xf32> to vector<8x16xf32>
    %cst_25 = arith.constant dense<0.000000e+00> : vector<8x8xf32>
    %54 = tpu.matmul %52, %53, %cst_25 {dimension_numbers = #tpu.dot_dimension_numbers<[1], [1], [0], [0], [0, 0, 1, 0], [], []>} : vector<8x16xf32>, vector<8x16xf32>, vector<8x8xf32> -> vector<8x8xf32>
    %55 = arith.addf %54, %8 : vector<8x8xf32>
    %cst_26 = arith.constant dense<0xFF800000> : vector<8xf32>
    %56 = vector.multi_reduction <maximumf>, %55, %cst_26 [1] : vector<8x8xf32> to vector<8xf32>
    %57 = vector.shape_cast %56 : vector<8xf32> to vector<8x1xf32>
    %58 = vector.broadcast %57 : vector<8x1xf32> to vector<8x8xf32>
    %59 = arith.subf %55, %58 : vector<8x8xf32>
    %60 = math.exp %59 : vector<8x8xf32>
    %cst_27 = arith.constant dense<0.000000e+00> : vector<8xf32>
    %61 = vector.multi_reduction <add>, %60, %cst_27 [1] : vector<8x8xf32> to vector<8xf32>
    %62 = vector.shape_cast %61 : vector<8xf32> to vector<8x1xf32>
    %63 = tpu.reciprocal %62 {approx = true} : vector<8x1xf32> -> vector<8x1xf32>
    %64 = vector.broadcast %63 : vector<8x1xf32> to vector<8x8xf32>
    %65 = arith.mulf %60, %64 : vector<8x8xf32>
    %66 = vector.extract_strided_slice %33 {offsets = [0, 16], sizes = [8, 16], strides = [1, 1]} : vector<8x32xf32> to vector<8x16xf32>
    %cst_28 = arith.constant dense<0.000000e+00> : vector<8x16xf32>
    %67 = tpu.matmul %65, %66, %cst_28 {dimension_numbers = #tpu.dot_dimension_numbers<[1], [0], [0], [1], [0, 0, 1, 1], [], []>} : vector<8x8xf32>, vector<8x16xf32>, vector<8x16xf32> -> vector<8x16xf32>
    %68 = tpu.concatenate %51, %67 in 1 : vector<8x16xf32>, vector<8x16xf32> -> vector<8x32xf32>
    %cst_29 = arith.constant dense<0.000000e+00> : vector<8x32xf32>
    %69 = tpu.matmul %68, %35, %cst_29 {dimension_numbers = #tpu.dot_dimension_numbers<[1], [0], [0], [1], [0, 0, 1, 1], [], []>} : vector<8x32xf32>, vector<32x32xf32>, vector<8x32xf32> -> vector<8x32xf32>
    %70 = vector.broadcast %14 : vector<1x32xf32> to vector<8x32xf32>
    %71 = arith.addf %69, %70 : vector<8x32xf32>
    %72 = arith.addf %4, %71 : vector<8x32xf32>
    %cst_30 = arith.constant dense<0.000000e+00> : vector<8xf32>
    %73 = vector.multi_reduction <add>, %72, %cst_30 [1] : vector<8x32xf32> to vector<8xf32>
    %74 = vector.shape_cast %73 : vector<8xf32> to vector<8x1xf32>
    %cst_31 = arith.constant 3.200000e+01 : f32
    %75 = vector.broadcast %cst_31 : f32 to vector<8x1xf32>
    %76 = arith.divf %74, %75 : vector<8x1xf32>
    %77 = vector.broadcast %76 : vector<8x1xf32> to vector<8x32xf32>
    %78 = arith.subf %72, %77 : vector<8x32xf32>
    %79 = arith.mulf %78, %78 : vector<8x32xf32>
    %cst_32 = arith.constant dense<0.000000e+00> : vector<8xf32>
    %80 = vector.multi_reduction <add>, %79, %cst_32 [1] : vector<8x32xf32> to vector<8xf32>
    %81 = vector.shape_cast %80 : vector<8xf32> to vector<8x1xf32>
    %cst_33 = arith.constant 3.200000e+01 : f32
    %82 = vector.broadcast %cst_33 : f32 to vector<8x1xf32>
    %83 = arith.divf %81, %82 : vector<8x1xf32>
    %84 = vector.broadcast %76 : vector<8x1xf32> to vector<8x32xf32>
    %85 = arith.subf %72, %84 : vector<8x32xf32>
    %cst_34 = arith.constant 9.99999974E-6 : f32
    %86 = vector.broadcast %cst_34 : f32 to vector<8x1xf32>
    %87 = arith.addf %83, %86 : vector<8x1xf32>
    %88 = math.rsqrt %87 : vector<8x1xf32>
    %89 = vector.broadcast %88 : vector<8x1xf32> to vector<8x32xf32>
    %90 = arith.mulf %85, %89 : vector<8x32xf32>
    %91 = vector.broadcast %15 : vector<1x32xf32> to vector<8x32xf32>
    %92 = arith.mulf %90, %91 : vector<8x32xf32>
    %93 = vector.broadcast %16 : vector<1x32xf32> to vector<8x32xf32>
    %94 = arith.addf %92, %93 : vector<8x32xf32>
    %c0_35 = arith.constant 0 : index
    %c0_36 = arith.constant 0 : index
    %c0_37 = arith.constant 0 : index
    %95 = vector.load %arg8[%c0_35, %c0_36, %c0_37] : memref<1x32x32xf32, #tpu.memory_space<vmem>>, vector<1x32x32xf32>
    %96 = vector.shape_cast %95 : vector<1x32x32xf32> to vector<32x32xf32>
    %cst_38 = arith.constant dense<0.000000e+00> : vector<8x32xf32>
    %97 = tpu.matmul %94, %96, %cst_38 {dimension_numbers = #tpu.dot_dimension_numbers<[1], [0], [0], [1], [0, 0, 1, 1], [], []>} : vector<8x32xf32>, vector<32x32xf32>, vector<8x32xf32> -> vector<8x32xf32>
    %98 = vector.broadcast %17 : vector<1x32xf32> to vector<8x32xf32>
    %99 = arith.addf %97, %98 : vector<8x32xf32>
    %c0_39 = arith.constant 0 : index
    %c0_40 = arith.constant 0 : index
    %c0_41 = arith.constant 0 : index
    %100 = vector.load %arg9[%c0_39, %c0_40, %c0_41] : memref<1x32x64xf32, #tpu.memory_space<vmem>>, vector<1x32x64xf32>
    %101 = vector.shape_cast %100 : vector<1x32x64xf32> to vector<32x64xf32>
    %cst_42 = arith.constant dense<0.000000e+00> : vector<8x64xf32>
    %102 = tpu.matmul %6, %101, %cst_42 {dimension_numbers = #tpu.dot_dimension_numbers<[1], [0], [0], [1], [0, 0, 1, 1], [], []>} : vector<8x32xf32>, vector<32x64xf32>, vector<8x64xf32> -> vector<8x64xf32>
    %103 = vector.broadcast %18 : vector<1x64xf32> to vector<8x64xf32>
    %104 = arith.addf %102, %103 : vector<8x64xf32>
    %105 = vector.extract_strided_slice %104 {offsets = [0, 0], sizes = [8, 32], strides = [1, 1]} : vector<8x64xf32> to vector<8x32xf32>
    %106 = vector.extract_strided_slice %104 {offsets = [0, 32], sizes = [8, 32], strides = [1, 1]} : vector<8x64xf32> to vector<8x32xf32>
    %c0_43 = arith.constant 0 : index
    %c0_44 = arith.constant 0 : index
    %c0_45 = arith.constant 0 : index
    %107 = vector.load %arg10[%c0_43, %c0_44, %c0_45] : memref<1x32x32xf32, #tpu.memory_space<vmem>>, vector<1x32x32xf32>
    %108 = vector.shape_cast %107 : vector<1x32x32xf32> to vector<32x32xf32>
    %109 = vector.extract_strided_slice %99 {offsets = [0, 0], sizes = [8, 16], strides = [1, 1]} : vector<8x32xf32> to vector<8x16xf32>
    %110 = vector.extract_strided_slice %105 {offsets = [0, 0], sizes = [8, 16], strides = [1, 1]} : vector<8x32xf32> to vector<8x16xf32>
    %cst_46 = arith.constant dense<0.000000e+00> : vector<8x8xf32>
    %111 = tpu.matmul %109, %110, %cst_46 {dimension_numbers = #tpu.dot_dimension_numbers<[1], [1], [0], [0], [0, 0, 1, 0], [], []>} : vector<8x16xf32>, vector<8x16xf32>, vector<8x8xf32> -> vector<8x8xf32>
    %112 = arith.addf %111, %10 : vector<8x8xf32>
    %cst_47 = arith.constant dense<0xFF800000> : vector<8xf32>
    %113 = vector.multi_reduction <maximumf>, %112, %cst_47 [1] : vector<8x8xf32> to vector<8xf32>
    %114 = vector.shape_cast %113 : vector<8xf32> to vector<8x1xf32>
    %115 = vector.broadcast %114 : vector<8x1xf32> to vector<8x8xf32>
    %116 = arith.subf %112, %115 : vector<8x8xf32>
    %117 = math.exp %116 : vector<8x8xf32>
    %cst_48 = arith.constant dense<0.000000e+00> : vector<8xf32>
    %118 = vector.multi_reduction <add>, %117, %cst_48 [1] : vector<8x8xf32> to vector<8xf32>
    %119 = vector.shape_cast %118 : vector<8xf32> to vector<8x1xf32>
    %120 = tpu.reciprocal %119 {approx = true} : vector<8x1xf32> -> vector<8x1xf32>
    %121 = vector.broadcast %120 : vector<8x1xf32> to vector<8x8xf32>
    %122 = arith.mulf %117, %121 : vector<8x8xf32>
    %123 = vector.extract_strided_slice %106 {offsets = [0, 0], sizes = [8, 16], strides = [1, 1]} : vector<8x32xf32> to vector<8x16xf32>
    %cst_49 = arith.constant dense<0.000000e+00> : vector<8x16xf32>
    %124 = tpu.matmul %122, %123, %cst_49 {dimension_numbers = #tpu.dot_dimension_numbers<[1], [0], [0], [1], [0, 0, 1, 1], [], []>} : vector<8x8xf32>, vector<8x16xf32>, vector<8x16xf32> -> vector<8x16xf32>
    %125 = vector.extract_strided_slice %99 {offsets = [0, 16], sizes = [8, 16], strides = [1, 1]} : vector<8x32xf32> to vector<8x16xf32>
    %126 = vector.extract_strided_slice %105 {offsets = [0, 16], sizes = [8, 16], strides = [1, 1]} : vector<8x32xf32> to vector<8x16xf32>
    %cst_50 = arith.constant dense<0.000000e+00> : vector<8x8xf32>
    %127 = tpu.matmul %125, %126, %cst_50 {dimension_numbers = #tpu.dot_dimension_numbers<[1], [1], [0], [0], [0, 0, 1, 0], [], []>} : vector<8x16xf32>, vector<8x16xf32>, vector<8x8xf32> -> vector<8x8xf32>
    %128 = arith.addf %127, %10 : vector<8x8xf32>
    %cst_51 = arith.constant dense<0xFF800000> : vector<8xf32>
    %129 = vector.multi_reduction <maximumf>, %128, %cst_51 [1] : vector<8x8xf32> to vector<8xf32>
    %130 = vector.shape_cast %129 : vector<8xf32> to vector<8x1xf32>
    %131 = vector.broadcast %130 : vector<8x1xf32> to vector<8x8xf32>
    %132 = arith.subf %128, %131 : vector<8x8xf32>
    %133 = math.exp %132 : vector<8x8xf32>
    %cst_52 = arith.constant dense<0.000000e+00> : vector<8xf32>
    %134 = vector.multi_reduction <add>, %133, %cst_52 [1] : vector<8x8xf32> to vector<8xf32>
    %135 = vector.shape_cast %134 : vector<8xf32> to vector<8x1xf32>
    %136 = tpu.reciprocal %135 {approx = true} : vector<8x1xf32> -> vector<8x1xf32>
    %137 = vector.broadcast %136 : vector<8x1xf32> to vector<8x8xf32>
    %138 = arith.mulf %133, %137 : vector<8x8xf32>
    %139 = vector.extract_strided_slice %106 {offsets = [0, 16], sizes = [8, 16], strides = [1, 1]} : vector<8x32xf32> to vector<8x16xf32>
    %cst_53 = arith.constant dense<0.000000e+00> : vector<8x16xf32>
    %140 = tpu.matmul %138, %139, %cst_53 {dimension_numbers = #tpu.dot_dimension_numbers<[1], [0], [0], [1], [0, 0, 1, 1], [], []>} : vector<8x8xf32>, vector<8x16xf32>, vector<8x16xf32> -> vector<8x16xf32>
    %141 = tpu.concatenate %124, %140 in 1 : vector<8x16xf32>, vector<8x16xf32> -> vector<8x32xf32>
    %cst_54 = arith.constant dense<0.000000e+00> : vector<8x32xf32>
    %142 = tpu.matmul %141, %108, %cst_54 {dimension_numbers = #tpu.dot_dimension_numbers<[1], [0], [0], [1], [0, 0, 1, 1], [], []>} : vector<8x32xf32>, vector<32x32xf32>, vector<8x32xf32> -> vector<8x32xf32>
    %143 = vector.broadcast %19 : vector<1x32xf32> to vector<8x32xf32>
    %144 = arith.addf %142, %143 : vector<8x32xf32>
    %145 = arith.addf %94, %144 : vector<8x32xf32>
    %cst_55 = arith.constant dense<0.000000e+00> : vector<8xf32>
    %146 = vector.multi_reduction <add>, %145, %cst_55 [1] : vector<8x32xf32> to vector<8xf32>
    %147 = vector.shape_cast %146 : vector<8xf32> to vector<8x1xf32>
    %cst_56 = arith.constant 3.200000e+01 : f32
    %148 = vector.broadcast %cst_56 : f32 to vector<8x1xf32>
    %149 = arith.divf %147, %148 : vector<8x1xf32>
    %150 = vector.broadcast %149 : vector<8x1xf32> to vector<8x32xf32>
    %151 = arith.subf %145, %150 : vector<8x32xf32>
    %152 = arith.mulf %151, %151 : vector<8x32xf32>
    %cst_57 = arith.constant dense<0.000000e+00> : vector<8xf32>
    %153 = vector.multi_reduction <add>, %152, %cst_57 [1] : vector<8x32xf32> to vector<8xf32>
    %154 = vector.shape_cast %153 : vector<8xf32> to vector<8x1xf32>
    %cst_58 = arith.constant 3.200000e+01 : f32
    %155 = vector.broadcast %cst_58 : f32 to vector<8x1xf32>
    %156 = arith.divf %154, %155 : vector<8x1xf32>
    %157 = vector.broadcast %149 : vector<8x1xf32> to vector<8x32xf32>
    %158 = arith.subf %145, %157 : vector<8x32xf32>
    %cst_59 = arith.constant 9.99999974E-6 : f32
    %159 = vector.broadcast %cst_59 : f32 to vector<8x1xf32>
    %160 = arith.addf %156, %159 : vector<8x1xf32>
    %161 = math.rsqrt %160 : vector<8x1xf32>
    %162 = vector.broadcast %161 : vector<8x1xf32> to vector<8x32xf32>
    %163 = arith.mulf %158, %162 : vector<8x32xf32>
    %164 = vector.broadcast %20 : vector<1x32xf32> to vector<8x32xf32>
    %165 = arith.mulf %163, %164 : vector<8x32xf32>
    %166 = vector.broadcast %21 : vector<1x32xf32> to vector<8x32xf32>
    %167 = arith.addf %165, %166 : vector<8x32xf32>
    %c0_60 = arith.constant 0 : index
    %c0_61 = arith.constant 0 : index
    %c0_62 = arith.constant 0 : index
    %168 = vector.load %arg11[%c0_60, %c0_61, %c0_62] : memref<1x32x64xf32, #tpu.memory_space<vmem>>, vector<1x32x64xf32>
    %169 = vector.shape_cast %168 : vector<1x32x64xf32> to vector<32x64xf32>
    %cst_63 = arith.constant dense<0.000000e+00> : vector<8x64xf32>
    %170 = tpu.matmul %167, %169, %cst_63 {dimension_numbers = #tpu.dot_dimension_numbers<[1], [0], [0], [1], [0, 0, 1, 1], [], []>} : vector<8x32xf32>, vector<32x64xf32>, vector<8x64xf32> -> vector<8x64xf32>
    %171 = vector.broadcast %22 : vector<1x64xf32> to vector<8x64xf32>
    %172 = arith.addf %170, %171 : vector<8x64xf32>
    %cst_64 = arith.constant 0.000000e+00 : f32
    %173 = vector.broadcast %cst_64 : f32 to vector<8x64xf32>
    %174 = arith.maximumf %172, %173 : vector<8x64xf32>
    %c0_65 = arith.constant 0 : index
    %c0_66 = arith.constant 0 : index
    %c0_67 = arith.constant 0 : index
    %175 = vector.load %arg12[%c0_65, %c0_66, %c0_67] : memref<1x64x32xf32, #tpu.memory_space<vmem>>, vector<1x64x32xf32>
    %176 = vector.shape_cast %175 : vector<1x64x32xf32> to vector<64x32xf32>
    %cst_68 = arith.constant dense<0.000000e+00> : vector<8x32xf32>
    %177 = tpu.matmul %174, %176, %cst_68 {dimension_numbers = #tpu.dot_dimension_numbers<[1], [0], [0], [1], [0, 0, 1, 1], [], []>} : vector<8x64xf32>, vector<64x32xf32>, vector<8x32xf32> -> vector<8x32xf32>
    %178 = vector.broadcast %23 : vector<1x32xf32> to vector<8x32xf32>
    %179 = arith.addf %177, %178 : vector<8x32xf32>
    %180 = arith.addf %167, %179 : vector<8x32xf32>
    %cst_69 = arith.constant dense<0.000000e+00> : vector<8xf32>
    %181 = vector.multi_reduction <add>, %180, %cst_69 [1] : vector<8x32xf32> to vector<8xf32>
    %182 = vector.shape_cast %181 : vector<8xf32> to vector<8x1xf32>
    %cst_70 = arith.constant 3.200000e+01 : f32
    %183 = vector.broadcast %cst_70 : f32 to vector<8x1xf32>
    %184 = arith.divf %182, %183 : vector<8x1xf32>
    %185 = vector.broadcast %184 : vector<8x1xf32> to vector<8x32xf32>
    %186 = arith.subf %180, %185 : vector<8x32xf32>
    %187 = arith.mulf %186, %186 : vector<8x32xf32>
    %cst_71 = arith.constant dense<0.000000e+00> : vector<8xf32>
    %188 = vector.multi_reduction <add>, %187, %cst_71 [1] : vector<8x32xf32> to vector<8xf32>
    %189 = vector.shape_cast %188 : vector<8xf32> to vector<8x1xf32>
    %cst_72 = arith.constant 3.200000e+01 : f32
    %190 = vector.broadcast %cst_72 : f32 to vector<8x1xf32>
    %191 = arith.divf %189, %190 : vector<8x1xf32>
    %192 = vector.broadcast %184 : vector<8x1xf32> to vector<8x32xf32>
    %193 = arith.subf %180, %192 : vector<8x32xf32>
    %cst_73 = arith.constant 9.99999974E-6 : f32
    %194 = vector.broadcast %cst_73 : f32 to vector<8x1xf32>
    %195 = arith.addf %191, %194 : vector<8x1xf32>
    %196 = math.rsqrt %195 : vector<8x1xf32>
    %197 = vector.broadcast %196 : vector<8x1xf32> to vector<8x32xf32>
    %198 = arith.mulf %193, %197 : vector<8x32xf32>
    %199 = vector.broadcast %24 : vector<1x32xf32> to vector<8x32xf32>
    %200 = arith.mulf %198, %199 : vector<8x32xf32>
    %201 = vector.broadcast %25 : vector<1x32xf32> to vector<8x32xf32>
    %202 = arith.addf %200, %201 : vector<8x32xf32>
    %c0_74 = arith.constant 0 : index
    %c0_75 = arith.constant 0 : index
    %c0_76 = arith.constant 0 : index
    %203 = vector.load %arg16[%c0_74, %c0_75, %c0_76] : memref<1x8x32xf32, #tpu.memory_space<vmem>>, vector<1x8x32xf32>
    %204 = vector.shape_cast %203 : vector<1x8x32xf32> to vector<8x32xf32>
    %205 = vector.shape_cast %202 : vector<8x32xf32> to vector<1x8x32xf32>
    tpu.vector_store %arg16[%c0_74, %c0_75, %c0_76], %205 {strides = array<i32>} : memref<1x8x32xf32, #tpu.memory_space<vmem>>, vector<1x8x32xf32>,
    %c1_i32 = arith.constant 1 : i32
    %206 = arith.cmpi eq, %arg1, %c1_i32 : i32
    %207 = arith.extui %206 : i1 to i32
    %c0_i32_77 = arith.constant 0 : i32
    %208 = arith.cmpi ne, %207, %c0_i32_77 : i32
    scf.if %208 {
      %c0_78 = arith.constant 0 : index
      %c0_79 = arith.constant 0 : index
      %209 = vector.load %arg14[%c0_78, %c0_79] : memref<32x128xf32, #tpu.memory_space<vmem>>, vector<32x128xf32>
      %cst_80 = arith.constant dense<0.000000e+00> : vector<8x128xf32>
      %210 = tpu.matmul %202, %209, %cst_80 {dimension_numbers = #tpu.dot_dimension_numbers<[1], [0], [0], [1], [0, 0, 1, 1], [], []>} : vector<8x32xf32>, vector<32x128xf32>, vector<8x128xf32> -> vector<8x128xf32>
      %c0_81 = arith.constant 0 : index
      %c0_82 = arith.constant 0 : index
      %211 = vector.load %arg15[%c0_81, %c0_82] : memref<1x128xf32, #tpu.memory_space<vmem>>, vector<1x128xf32>
      %212 = vector.broadcast %211 : vector<1x128xf32> to vector<8x128xf32>
      %213 = arith.addf %210, %212 : vector<8x128xf32>
      %cst_83 = arith.constant dense<0xFF800000> : vector<8xf32>
      %214 = vector.multi_reduction <maximumf>, %213, %cst_83 [1] : vector<8x128xf32> to vector<8xf32>
      %215 = vector.shape_cast %214 : vector<8xf32> to vector<8x1xf32>
      %216 = vector.broadcast %215 : vector<8x1xf32> to vector<8x128xf32>
      %217 = arith.subf %213, %216 : vector<8x128xf32>
      %218 = math.exp %217 : vector<8x128xf32>
      %cst_84 = arith.constant dense<0.000000e+00> : vector<8xf32>
      %219 = vector.multi_reduction <add>, %218, %cst_84 [1] : vector<8x128xf32> to vector<8xf32>
      %220 = vector.shape_cast %219 : vector<8xf32> to vector<8x1xf32>
      %221 = math.log %220 : vector<8x1xf32>
      %222 = vector.broadcast %221 : vector<8x1xf32> to vector<8x128xf32>
      %223 = arith.subf %217, %222 : vector<8x128xf32>
      %c0_85 = arith.constant 0 : index
      %c0_86 = arith.constant 0 : index
      %c0_87 = arith.constant 0 : index
      %224 = vector.load %arg17[%c0_85, %c0_86, %c0_87] : memref<1x8x128xf32, #tpu.memory_space<vmem>>, vector<1x8x128xf32>
      %225 = vector.shape_cast %224 : vector<1x8x128xf32> to vector<8x128xf32>
      %226 = vector.shape_cast %223 : vector<8x128xf32> to vector<1x8x128xf32>
      tpu.vector_store %arg17[%c0_85, %c0_86, %c0_87], %226 {strides = array<i32>} : memref<1x8x128xf32, #tpu.memory_space<vmem>>, vector<1x8x128xf32>,
    } else {
    }
    return
  }
  func.func @transform_0(%arg0: i32, %arg1: i32) -> (i32, i32, i32) {
    %c0_i32 = arith.constant 0 : i32
    %c0_i32_0 = arith.constant 0 : i32
    %c0_i32_1 = arith.constant 0 : i32
    return %arg0, %c0_i32, %c0_i32_0 : i32, i32, i32
  }
  func.func @transform_1(%arg0: i32, %arg1: i32) -> (i32, i32, i32) {
    %c0_i32 = arith.constant 0 : i32
    %c0_i32_0 = arith.constant 0 : i32
    %c0_i32_1 = arith.constant 0 : i32
    return %arg0, %c0_i32, %c0_i32_0 : i32, i32, i32
  }
  func.func @transform_2(%arg0: i32, %arg1: i32) -> (i32, i32, i32) {
    %c0_i32 = arith.constant 0 : i32
    %c0_i32_0 = arith.constant 0 : i32
    %c0_i32_1 = arith.constant 0 : i32
    return %arg0, %c0_i32, %c0_i32_0 : i32, i32, i32
  }
  func.func @transform_3(%arg0: i32, %arg1: i32) -> (i32, i32, i32) {
    %c0_i32 = arith.constant 0 : i32
    %c0_i32_0 = arith.constant 0 : i32
    %c0_i32_1 = arith.constant 0 : i32
    return %arg0, %c0_i32, %c0_i32_0 : i32, i32, i32
  }
  func.func @transform_4(%arg0: i32, %arg1: i32) -> (i32, i32, i32) {
    %c0_i32 = arith.constant 0 : i32
    %c0_i32_0 = arith.constant 0 : i32
    %c0_i32_1 = arith.constant 0 : i32
    return %arg1, %c0_i32, %c0_i32_0 : i32, i32, i32
  }
  func.func @transform_5(%arg0: i32, %arg1: i32) -> (i32, i32, i32) {
    %c0_i32 = arith.constant 0 : i32
    %c0_i32_0 = arith.constant 0 : i32
    %c0_i32_1 = arith.constant 0 : i32
    return %arg1, %c0_i32, %c0_i32_0 : i32, i32, i32
  }
  func.func @transform_6(%arg0: i32, %arg1: i32) -> (i32, i32, i32) {
    %c0_i32 = arith.constant 0 : i32
    %c0_i32_0 = arith.constant 0 : i32
    %c0_i32_1 = arith.constant 0 : i32
    return %arg1, %c0_i32, %c0_i32_0 : i32, i32, i32
  }
  func.func @transform_7(%arg0: i32, %arg1: i32) -> (i32, i32, i32) {
    %c0_i32 = arith.constant 0 : i32
    %c0_i32_0 = arith.constant 0 : i32
    %c0_i32_1 = arith.constant 0 : i32
    return %arg1, %c0_i32, %c0_i32_0 : i32, i32, i32
  }
  func.func @transform_8(%arg0: i32, %arg1: i32) -> (i32, i32, i32) {
    %c0_i32 = arith.constant 0 : i32
    %c0_i32_0 = arith.constant 0 : i32
    %c0_i32_1 = arith.constant 0 : i32
    return %arg1, %c0_i32, %c0_i32_0 : i32, i32, i32
  }
  func.func @transform_9(%arg0: i32, %arg1: i32) -> (i32, i32, i32) {
    %c0_i32 = arith.constant 0 : i32
    %c0_i32_0 = arith.constant 0 : i32
    %c0_i32_1 = arith.constant 0 : i32
    return %arg1, %c0_i32, %c0_i32_0 : i32, i32, i32
  }
  func.func @transform_10(%arg0: i32, %arg1: i32) -> (i32, i32, i32) {
    %c0_i32 = arith.constant 0 : i32
    %c0_i32_0 = arith.constant 0 : i32
    %c0_i32_1 = arith.constant 0 : i32
    return %arg1, %c0_i32, %c0_i32_0 : i32, i32, i32
  }
  func.func @transform_11(%arg0: i32, %arg1: i32) -> (i32, i32, i32) {
    %c0_i32 = arith.constant 0 : i32
    %c0_i32_0 = arith.constant 0 : i32
    %c0_i32_1 = arith.constant 0 : i32
    return %arg1, %c0_i32, %c0_i32_0 : i32, i32, i32
  }
  func.func @transform_12(%arg0: i32, %arg1: i32) -> (i32, i32) {
    %c0_i32 = arith.constant 0 : i32
    %c0_i32_0 = arith.constant 0 : i32
    %c0_i32_1 = arith.constant 0 : i32
    return %c0_i32, %c0_i32_0 : i32, i32
  }
  func.func @transform_13(%arg0: i32, %arg1: i32) -> (i32, i32) {
    %c0_i32 = arith.constant 0 : i32
    %c0_i32_0 = arith.constant 0 : i32
    %c0_i32_1 = arith.constant 0 : i32
    return %c0_i32, %c0_i32_0 : i32, i32
  }
  func.func @transform_14(%arg0: i32, %arg1: i32) -> (i32, i32, i32) {
    %c0_i32 = arith.constant 0 : i32
    %c0_i32_0 = arith.constant 0 : i32
    %c0_i32_1 = arith.constant 0 : i32
    return %arg0, %c0_i32, %c0_i32_0 : i32, i32, i32
  }
  func.func @transform_15(%arg0: i32, %arg1: i32) -> (i32, i32, i32) {
    %c0_i32 = arith.constant 0 : i32
    %c0_i32_0 = arith.constant 0 : i32
    %c0_i32_1 = arith.constant 0 : i32
    return %arg0, %c0_i32, %c0_i32_0 : i32, i32, i32
  }
}

</mosaic_0001>

<bundles_post_ra>
// kernel: transformer_forward.2
= control target key start
LH: loop header
LB: loop body
LE: loop exit
PB: predicated region body
PF: predicated region fallthrough
CT: control target
= control target key end

     0   :  { %s1581_s24 = smov 0   ;;  %s1583_s25 = smov 0   ;;  %s1768_s0 = inlined_call_operand.vmem [shape: f32[2,8,32], index: 0, kind: input, shape index: {}]   ;;  %s1769_s1 = inlined_call_operand.vmem [shape: f32[2,8,8], index: 1, kind: input, shape index: {}]   ;;  %s1770_s2 = inlined_call_operand.vmem [shape: f32[2,32,96], index: 2, kind: input, shape index: {}]   ;;  %s1771_s3 = inlined_call_operand.vmem [shape: f32[2,32,32], index: 3, kind: input, shape index: {}]   ;;  %s1772_s4 = inlined_call_operand.vmem [shape: f32[2,32,64], index: 4, kind: input, shape index: {}]   ;;  %s1773_s5 = inlined_call_operand.vmem [shape: f32[2,64,32], index: 5, kind: input, shape index: {}]   ;;  %s1774_s6 = inlined_call_operand.vmem [shape: f32[2,8,128], index: 6, kind: input, shape index: {}]   ;;  %s1775_s7 = inlined_call_operand.vmem [shape: f32[2,8,32], index: 7, kind: output, shape index: {}]  }
   0x1   :  { %1776 = sst [smem:[#allocation4_spill]] %s1768_s0  ;;  %s1585_s26 = smov 0  }
   0x2   :  { %s1587_s27 = smov 0   ;;  %s1589_s28 = smov 0  }
   0x3 LB: > { %s26_s29 = sadd.s32 1, %s1522_s26  ;;  %s29_s30 = sadd.s32 1, %s1526_s27  ;;  %s1530_s28 = sphi %s1589_s28, %s17_s28   ;;  %s1526_s27 = sphi %s1587_s27, %s1786_s27   ;;  %s1522_s26 = sphi %s1585_s26, %s1785_s26   ;;  %s1518_s25 = sphi %s1583_s25, %s1784_s25   ;;  %s1514_s24 = sphi %s1581_s24, %s1783_s24  }
   0x4   : > { %p27_p0 = scmp.ge.s32.totalorder %s26_s29, 2  ;;  %p1267_p1 = scmp.ge.s32.totalorder %s1530_s28, 1 }
   0x5   : > { %p306_p2 = scmp.lt.s32.totalorder %s1530_s28, 5 }
   0x6   : > { %s1788_s29 = smov (%p27_p0, %s26_s29), 0  ;;  %s1790_s30 = smov (!%p27_p0, %s29_s30), %s1526_s27 }
   0x7   : > { %1777 = sst [smem:[#allocation2_spill]] %s1788_s29  ;;  %p307_p3 = pnand %p1267_p1, %p306_p2 }
   0x8   : > { %p31_p4 = scmp.ge.s32.totalorder %s1790_s30, 2  ;;  %p364_p5 = scmp.lt.s32.totalorder (!%p307_p3), %s1518_s25, 1 }
   0x9   : > { %310 = sbr.rel (%p307_p3) target bundleno = 2502 (0x9c6), region = 48  ;;  %p372_p6 = scmp.lt.s32.totalorder (!%p307_p3), %s1514_s24, 1 }
   0xa   : > { %s1792_s30 = smov (%p31_p4, %s1790_s30), 0  ;;  %s1779_s0 = sld [smem:[#allocation4_spill]] (!%p307_p3) }
   0xb   : > { %1778 = sst [smem:[#allocation3_spill]] %s1792_s30  ;;  %p1280_p7 = scmp.ne.s32.totalorder (!%p307_p3), %s1514_s24, 0 }
  0x10   : > { %s1794_s25 = smov (!%p364_p5, %s1518_s25), 1  ;;  %vm405_vm0 = vcmask (!%p1280_p7), 261120  }
  0x11   : > { %s373_s8 = scalar_select %p372_p6, %s1514_s24, 1 }
  0x12   : > { %s1615_s9 = sshll.u32 %s1794_s25, 3  ;;  %403 = sbr.rel (%p1280_p7) target bundleno = 25 (0x19), region = 52 }
  0x13   : > { %s367_s12 = scalar_lea.vmem %s1779_s0, %s1615_s9  ;;  %s1293_s16 = sshll.u32 %s373_s8, 5 }
  0x14   : > { %s1296_s17 = sshll.u32 %s373_s8, 6  ;;  %s376_s20 = scalar_lea.vmem %s1770_s2, %s1293_s16  ;;  %v404_v0 = vld [vmem:[%s367_s12] sm:$0xff] (!%p1280_p7) }
  0x15   : > { %s1631_s23 = scalar_lea.vmem %s1771_s3, %s1293_s16  ;;  %s1636_s11 = scalar_lea.vmem %s1772_s4, %s1293_s16 }
  0x16   : > { %s1641_s13 = scalar_lea.vmem %s1773_s5, %s1296_s17  ;;  %s1278_s14 = sshll.u32 %s373_s8, 3 }
  0x17   : > { %s1647_s18 = scalar_lea.vmem %s1775_s7, %s1615_s9  ;;  %s1652_s22 = scalar_lea.vmem %s1774_s6, %s1278_s14 }
  0x18   : > { %406 = vst.msk [vmem:[%s1647_s18] sm:$0xff] (!%p1280_p7), %vm405_vm0, %v404_v0 }
  0x19 PF: > { %v410_v1 = vld [vmem:[%s376_s20] sm:$0xff]  ;;  %v411_v2 = vld [vmem:[%s376_s20 + $0x8] sm:$0xff]  ;;  %v412_v3 = vld [vmem:[%s376_s20 + $0x10] sm:$0xff]  ;;  %v1532_v4 = vmov 0.0|0.0   ;;  %vm1533_vm1 = vmmov 0   ;;  %v1534_v7 = vmov 0.0   ;;  %v414_v10 = vlaneseq  ;;  %s1780_s12 = scalar_lea.vmem %s1769_s1, %s1615_s9 }
  0x1a   : > { %1401 = vmatprep.subr.bf16.mxu1 %v1532_v4  ;;  %v1402_v5 = vpack.c.bf16 %v411_v2, %v410_v1  ;;  %v413_v6 = vld [vmem:[%s376_s20 + $0x18] sm:$0xff]  ;;  %1337 = vmatprep.mubr.msk.f32.mxu1 %vm1533_vm1, %v1534_v7  ;;  %vm418_vm2 = vcmask 261120   ;;  %v1675_v13 = vld [vmem:[%s1652_s22] sm:$0xff]  ;;  %s1535_s0 = smov 112   ;;  %s1536_s24 = smov 96   ;;  %vm499_vm3 = vcmask 130048  }
  0x1b   : > { %1350 = vmatprep.subr.mxu0 %v1534_v7  ;;  %1352 = vmatprep.mubr.msk.f32.mxu0 %vm1533_vm1, %v1534_v7  ;;  %v1405_v8 = vpack.c.bf16 %v413_v6, %v412_v3  ;;  %v1671_v11 = vshrl.u32 %v414_v10, 7  ;;  %s1537_s29 = smov 80   ;;  %v408_v21 = vld [vmem:[%s1780_s12] sm:$0xff]  ;;  %vm574_vm4 = vcmask 64512   ;;  %s1538_s9 = smov 48   ;;  %v493_v49 = vld [vmem:[%s1631_s23 + $0x8] sm:$0xff] }
  0x1c   : > { %1403 = vmatpush3.bf16.msra.mxu1 %v1402_v5  ;;  %s1539_s15 = smov 64   ;;  %v492_v48 = vld [vmem:[%s1631_s23] sm:$0xff]  ;;  %v494_v50 = vld [vmem:[%s1631_s23 + $0x10] sm:$0xff]  ;;  %v495_v52 = vld [vmem:[%s1631_s23 + $0x18] sm:$0xff]  ;;  %s1540_s16 = smov 16   ;;  %vm1028_vm5 = vcmask 523264  }
  0x1d   : > { %1404 = vmatprep.subr.bf16.mxu1 %v1532_v4  ;;  %v416_v12 = vsub.s32 0, %v1671_v11  ;;  %v1408_v51 = vpack.c.bf16 %v493_v49, %v492_v48  ;;  %v1411_v53 = vpack.c.bf16 %v495_v52, %v494_v50  ;;  %v834_v60 = vsub.s32 1, %v1671_v11  ;;  %v934_v10 = vld [vmem:[%s1636_s11] sm:$0xff] }
  0x1f   : > { %v1664_v9 = vld [vmem:[%s1647_s18] sm:$0xff]  ;;  %v417_v14 = vrot.slane %v1675_v13, %v416_v12  ;;  %v835_v61 = vrot.slane %v1675_v13, %v834_v60  ;;  %v935_v12 = vld [vmem:[%s1636_s11 + $0x8] sm:$0xff]  ;;  %v1118_v60 = vsub.s32 6, %v1671_v11 }
  0x20   : > { %1406 = vmatpush3.bf16.msra.mxu1 %v1405_v8 }
  0x21   : > { %1340 = vmatprep.subr.mxu1 %v1534_v7 }
  0x23   : > { %1338 = vmatmul.mubr.msk.f32.vlgmr.msra.gmra.mrb[0].mxu1 %vm418_vm2, %v1664_v9 }
  0x24   : > { %1342 = vmatprep.mubr.msk.f32.mxu1 %vm1533_vm1, %v1534_v7 }
  0xf6   : > { %v488_v15 = vpop.f32.mrb[0].mxu1 }
  0xf7   : > { %v489_v16 = vadd.f32 %v488_v15, %v417_v14  ;;  %v1339_v17 = vpop.f32.mrb[1].mxu1  ;;  %v1414_v14 = vpack.c.bf16 %v935_v12, %v934_v10  ;;  %v937_v15 = vld [vmem:[%s1636_s11 + $0x18] sm:$0xff] }
  0xf8   : > { %v1016_v17 = vld [vmem:[%s1641_s13] sm:$0xff] }
  0xf9   : > { %662 = vrot.lane.b32.xlu1 %v489_v16, %s1535_s0  ;;  %497 = vrot.lane.b32.xlu0 %v489_v16, %s1536_s24 }
  0xfd   : > { %664 = vrot.lane.b32.xlu0 %v489_v16, %s1537_s29 }
 0x16b   : > { %v498_v18 = vpop.permute.xlu0 %497  ;;  %v663_v20 = vpop.permute.xlu1 %662 }
 0x16c   : > { %1341 = vmatpush3.xpose.msk.msra.mxu1 %vm499_vm3, %v498_v18  ;;  %v1017_v18 = vld [vmem:[%s1641_s13 + $0x8] sm:$0xff] }
 0x16d   : > { %1345 = vmatprep.subr.mxu1 %v1534_v7 }
 0x16f   : > { %1343 = vmatmul.mubr.msk.f32.vlgmr.msra.gmra.mrb[2].mxu1 %vm499_vm3, %v489_v16  ;;  %v665_v19 = vpop.permute.xlu0 %664 }
 0x170   : > { %1351 = vmatpush3.xpose.msk.msra.mxu0 %vm499_vm3, %v665_v19  ;;  %1347 = vmatprep.mubr.msk.f32.mxu1 %vm1533_vm1, %v1534_v7  ;;  %v1018_v19 = vld [vmem:[%s1641_s13 + $0x10] sm:$0xff] }
 0x171   : > { %1407 = vmatprep.subr.bf16.mxu0 %v1532_v4 }
 0x173   : > { %1353 = vmatmul.mubr.msk.f32.vlgmr.msra.gmra.mrb[0].mxu0 %vm499_vm3, %v663_v20  ;;  %v1420_v20 = vpack.c.bf16 %v1017_v18, %v1016_v17 }
 0x174   : > { %1368 = vmatprep.mubr.msk.f32.mxu0 %vm1533_vm1, %v1534_v7  ;;  %1409 = vmatpush3.bf16.msra.mxu0 %v1408_v51 }
 0x175   : > { %1410 = vmatprep.subr.bf16.mxu0 %v1532_v4 }
 0x178   : > { %1412 = vmatpush3.bf16.msra.mxu0 %v1411_v53 }
 0x179   : > { %1419 = vmatprep.subr.bf16.mxu0 %v1532_v4 }
 0x242   : > { %v570_v22 = vpop.f32.mrb[2].mxu1 }
 0x243   : > { %v571_v23 = vadd.f32 %v570_v22, %v408_v21  ;;  %v1344_v24 = vpop.f32.mrb[3].mxu1 }
 0x244   : > { %v1021_v24 = vld [vmem:[%s1641_s13 + $0x28] sm:$0xff] }
 0x245   : > { %v575_v25 = vsel %vm574_vm4, %v571_v23, -inf }
 0x246   : > { %v736_v26 = vpop.f32.mrb[0].mxu0  ;;  %576 = vmax.xlane.f32.xlu1 %v575_v25 }
 0x247   : > { %v737_v27 = vadd.f32 %v736_v26, %v408_v21  ;;  %v1354_v28 = vpop.f32.mrb[1].mxu0  ;;  %v1019_v21 = vld [vmem:[%s1641_s13 + $0x18] sm:$0xff] }
 0x248   : > { %v1423_v22 = vpack.c.bf16 %v1019_v21, %v1018_v19 }
 0x249   : > { %v740_v29 = vsel %vm574_vm4, %v737_v27, -inf }
 0x24a   : > { %741 = vmax.xlane.f32.xlu0 %v740_v29  ;;  %v926_v29 = vsub.s32 2, %v1671_v11 }
 0x2d3   : > { %v577_v30 = vpop.xlane.xlu1 %576 }
 0x2d4   : > { %v578_v31 = vsub.f32 %v571_v23, %v577_v30  ;;  %v1020_v23 = vld [vmem:[%s1641_s13 + $0x20] sm:$0xff]  ;;  %v931_v30 = vsub.s32 3, %v1671_v11 }
 0x2d5   : > { %v1426_v25 = vpack.c.bf16 %v1021_v24, %v1020_v23 }
 0x2d6   : > { %v579_v32 = vmul.f32 1.442695, %v578_v31  ;;  %v927_v31 = vrot.slane %v1675_v13, %v926_v29 }
 0x2d7   : > { %v742_v33 = vpop.xlane.xlu0 %741 }
 0x2d8   : > { %1480 = vpow2.f32 %v579_v32  ;;  %v743_v34 = vsub.f32 %v737_v27, %v742_v33 }
 0x2da   : > { %v744_v35 = vmul.f32 1.442695, %v743_v34  ;;  %v932_v34 = vrot.slane %v1675_v13, %v931_v30 }
 0x2dc   : > { %1482 = vpow2.f32 %v744_v35 }
 0x2e2   : > { %v1481_v36 = vpop.eup %1480 }
 0x2e3   : > { %v581_v37 = vsel %vm574_vm4, %v1481_v36, 0.0 }
 0x2e4   : > { %582 = vadd.xlane.f32.xlu0 %v581_v37  ;;  %v1022_v37 = vld [vmem:[%s1641_s13 + $0x30] sm:$0xff] }
 0x2e6   : > { %v1483_v38 = vpop.eup %1482 }
 0x2e7   : > { %v746_v39 = vsel %vm574_vm4, %v1483_v38, 0.0 }
 0x2e8   : > { %747 = vadd.xlane.f32.xlu1 %v746_v39  ;;  %v940_v39 = vsub.s32 4, %v1671_v11 }
 0x2f9   : > { %751 = vrot.lane.b32.xlu1 %v489_v16, %s1538_s9 }
 0x2fa   : > { %586 = vrot.lane.b32.xlu0 %v489_v16, %s1539_s15 }
 0x371   : > { %v583_v40 = vpop.xlane.xlu0 %582 }
 0x372   : > { %1484 = vrcp.f32 %v583_v40  ;;  %v941_v40 = vrot.slane %v1675_v13, %v940_v39 }
 0x375   : > { %v587_v41 = vpop.permute.xlu0 %586  ;;  %v748_v42 = vpop.xlane.xlu1 %747 }
 0x376   : > { %1486 = vrcp.f32 %v748_v42  ;;  %1346 = vmatpush3.msra.mxu1 %v587_v41 }
 0x377   : > { %1355 = vmatprep.subr.mxu1 %v1534_v7 }
 0x379   : > { %v752_v45 = vpop.permute.xlu1 %751 }
 0x37c   : > { %v1485_v43 = vpop.eup %1484 }
 0x37d   : > { %v585_v44 = vmul.f32 %v1485_v43, %v1481_v36 }
 0x37f   : > { %1348 = vmatmul.mubr.msk.f32.vlgmr.msra.gmra.mrb[4].mxu1 %vm574_vm4, %v585_v44 }
 0x380   : > { %v1487_v46 = vpop.eup %1486  ;;  %1356 = vmatpush3.msra.mxu1 %v752_v45  ;;  %1357 = vmatprep.mubr.msk.f32.mxu1 %vm1533_vm1, %v1534_v7  ;;  %v1026_v45 = vsub.s32 5, %v1671_v11 }
 0x381   : > { %v750_v47 = vmul.f32 %v1487_v46, %v1483_v38  ;;  %1413 = vmatprep.subr.bf16.mxu1 %v1532_v4 }
 0x382   : > { %v1027_v46 = vrot.slane %v1675_v13, %v1026_v45 }
 0x383   : > { %1358 = vmatmul.mubr.msk.f32.vlgmr.msra.gmra.mrb[6].mxu1 %vm574_vm4, %v750_v47 }
 0x384   : > { %1379 = vmatprep.mubr.msk.f32.mxu1 %vm1533_vm1, %v1534_v7  ;;  %1415 = vmatpush3.bf16.msra.mxu1 %v1414_v14 }
 0x385   : > { %1416 = vmatprep.subr.bf16.mxu1 %v1532_v4 }
 0x452   : > { %v658_v54 = vpop.f32.mrb[4].mxu1 }
 0x453   : > { %v1349_v55 = vpop.f32.mrb[5].mxu1 }
 0x456   : > { %v823_v56 = vpop.f32.mrb[6].mxu1 }
 0x457   : > { %828 = vrot.lane.b32.xlu1 %v823_v56, %s1540_s16  ;;  %v1359_v57 = vpop.f32.mrb[7].mxu1 }
 0x4c9   : > { %v829_v58 = vpop.permute.xlu1 %828 }
 0x4ca   : > { %v831_v59 = vsel %vm499_vm3, %v658_v54, %v829_v58 }
 0x4cb   : > { %1369 = vmatmul.mubr.msk.f32.vlgmr.msra.gmra.mrb[2].mxu0 %vm418_vm2, %v831_v59 }
 0x4cc   : > { %1398 = vmatprep.mubr.msk.f32.mxu0 %vm1533_vm1, %v1534_v7  ;;  %1421 = vmatpush3.bf16.msra.mxu0 %v1420_v20 }
 0x4cd   : > { %1422 = vmatprep.subr.bf16.mxu0 %v1532_v4 }
 0x4d0   : > { %1424 = vmatpush3.bf16.msra.mxu0 %v1423_v22 }
 0x4d1   : > { %1425 = vmatprep.subr.bf16.mxu0 %v1532_v4 }
 0x4d4   : > { %1427 = vmatpush3.bf16.msra.mxu0 %v1426_v25 }
 0x4d5   : > { %1428 = vmatprep.subr.bf16.mxu0 %v1532_v4  ;;  %v1023_v4 = vld [vmem:[%s1641_s13 + $0x38] sm:$0xff] }
 0x4d6   : > { %v1429_v38 = vpack.c.bf16 %v1023_v4, %v1022_v37 }
 0x4d8   : > { %1430 = vmatpush3.bf16.msra.mxu0 %v1429_v38 }
 0x59e   : > { %v905_v62 = vpop.f32.mrb[2].mxu0 }
 0x59f   : > { %v906_v63 = vadd.f32 %v905_v62, %v835_v61  ;;  %v1370_v0 = vpop.f32.mrb[3].mxu0  ;;  %v1123_v61 = vsub.s32 7, %v1671_v11  ;;  %v1119_v62 = vrot.slane %v1675_v13, %v1118_v60 }
 0x5a1   : > { %v909_v1 = vadd.f32 %v906_v63, %v1664_v9  ;;  %v936_v9 = vld [vmem:[%s1636_s11 + $0x10] sm:$0xff]  ;;  %v1124_v0 = vrot.slane %v1675_v13, %v1123_v61 }
 0x5a2   : > { %v1417_v16 = vpack.c.bf16 %v937_v15, %v936_v9 }
 0x5a3   : > { %v910_v2 = vsel %vm418_vm2, %v909_v1, 0.0 }
 0x5a4   : > { %911 = vadd.xlane.f32.xlu0 %v910_v2  ;;  %1418 = vmatpush3.bf16.msra.mxu1 %v1417_v16 }
 0x631   : > { %v912_v3 = vpop.xlane.xlu0 %911 }
 0x632   : > { %v914_v5 = vmul.f32 0.03125, %v912_v3 }
 0x634   : > { %v915_v6 = vsub.f32 %v909_v1, %v914_v5 }
 0x636   : > { %v916_v7 = vmul.f32 %v915_v6, %v915_v6 }
 0x638   : > { %v917_v8 = vsel %vm418_vm2, %v916_v7, 0.0 }
 0x639   : > { %918 = vadd.xlane.f32.xlu1 %v917_v8 }
 0x6c6   : > { %v919_v26 = vpop.xlane.xlu1 %918 }
 0x6c7   : > { %v920_v27 = vmul.f32 0.03125, %v919_v26 }
 0x6c9   : > { %v921_v28 = vadd.f32 1e-05, %v920_v27 }
 0x6cb   : > { %1488 = vrsqrt.f32 %v921_v28 }
 0x6d5   : > { %v1489_v32 = vpop.eup %1488 }
 0x6d6   : > { %v923_v33 = vmul.f32 %v1489_v32, %v915_v6 }
 0x6d8   : > { %v928_v35 = vmul.f32 %v927_v31, %v923_v33 }
 0x6da   : > { %v933_v36 = vadd.f32 %v932_v34, %v928_v35 }
 0x6dc   : > { %1380 = vmatmul.mubr.msk.f32.vlgmr.msra.gmra.mrb[8].mxu1 %vm418_vm2, %v933_v36 }
 0x7af   : > { %v1011_v41 = vpop.f32.mrb[8].mxu1 }
 0x7b0   : > { %v1012_v42 = vadd.f32 %v1011_v41, %v941_v40  ;;  %v1381_v43 = vpop.f32.mrb[9].mxu1 }
 0x7b2   : > { %v1015_v44 = vmax.f32 %v1012_v42, 0.0 }
 0x7b4   : > { %1399 = vmatmul.mubr.msk.f32.vlgmr.msra.gmra.mrb[4].mxu0 %vm1028_vm5, %v1015_v44 }
 0x887   : > { %v1098_v47 = vpop.f32.mrb[4].mxu0 }
 0x888   : > { %v1099_v48 = vadd.f32 %v1098_v47, %v1027_v46  ;;  %v1400_v49 = vpop.f32.mrb[5].mxu0 }
 0x88a   : > { %v1102_v50 = vadd.f32 %v1099_v48, %v933_v36 }
 0x88c   : > { %v1103_v51 = vsel %vm418_vm2, %v1102_v50, 0.0 }
 0x88d   : > { %1104 = vadd.xlane.f32.xlu0 %v1103_v51 }
 0x91a   : > { %v1105_v52 = vpop.xlane.xlu0 %1104 }
 0x91b   : > { %v1106_v53 = vmul.f32 0.03125, %v1105_v52 }
 0x91d   : > { %v1107_v54 = vsub.f32 %v1102_v50, %v1106_v53 }
 0x91f   : > { %v1108_v55 = vmul.f32 %v1107_v54, %v1107_v54 }
 0x921   : > { %v1109_v56 = vsel %vm418_vm2, %v1108_v55, 0.0 }
 0x922   : > { %1110 = vadd.xlane.f32.xlu0 %v1109_v56 }
 0x9af   : > { %v1111_v57 = vpop.xlane.xlu0 %1110 }
 0x9b0   : > { %v1112_v58 = vmul.f32 0.03125, %v1111_v57 }
 0x9b2   : > { %v1113_v59 = vadd.f32 1e-05, %v1112_v58 }
 0x9b4   : > { %1490 = vrsqrt.f32 %v1113_v59 }
 0x9be   : > { %v1491_v63 = vpop.eup %1490 }
 0x9bf   : > { %v1115_v1 = vmul.f32 %v1491_v63, %v1107_v54 }
 0x9c1   : > { %v1120_v2 = vmul.f32 %v1119_v62, %v1115_v1 }
 0x9c3   : > { %v1125_v3 = vadd.f32 %v1124_v0, %v1120_v2 }
 0x9c5   : > { %1126 = vst.msk [vmem:[%s1647_s18] sm:$0xff] %vm418_vm2, %v1125_v3 }
 0x9c6 PF: > { %s17_s28 = sadd.s32 1, %s1530_s28   ;;  %s1781_s17 = sld [smem:[#allocation2_spill]] }
 0x9c7   : > { %p14_p8 = scmp.ge.s32.totalorder %s17_s28, 6   ;;  %s1782_s20 = sld [smem:[#allocation3_spill]] }
 0x9c8   : > { %s1783_s24 = smov %s1522_s26  ;;  %s1784_s25 = smov %s1526_s27 }
 0x9c9   :  { %16 = sbr.rel (!%p14_p8) target bundleno = 3 (0x3), region = 100 }
 0x9cc   : > { %s1785_s26 = smov %s1781_s17 }
 0x9cd   : > { %s1786_s27 = smov %s1782_s20 }

// kernel: transformer_forward.3
= control target key start
LH: loop header
LB: loop body
LE: loop exit
PB: predicated region body
PF: predicated region fallthrough
CT: control target
= control target key end

     0   :  { %s3500_s0 = inlined_call_operand.vmem [shape: f32[2,8,32], index: 0, kind: input, shape index: {}]   ;;  %s3501_s1 = inlined_call_operand.vmem [shape: f32[2,8,32], index: 1, kind: input, shape index: {}]   ;;  %s3502_s2 = inlined_call_operand.vmem [shape: f32[2,8,8], index: 2, kind: input, shape index: {}]   ;;  %s3503_s3 = inlined_call_operand.vmem [shape: f32[2,8,8], index: 3, kind: input, shape index: {}]   ;;  %s3504_s4 = inlined_call_operand.vmem [shape: f32[2,32,96], index: 4, kind: input, shape index: {}]   ;;  %s3505_s5 = inlined_call_operand.vmem [shape: f32[2,32,32], index: 5, kind: input, shape index: {}]   ;;  %s3506_s6 = inlined_call_operand.vmem [shape: f32[2,32,32], index: 6, kind: input, shape index: {}]   ;;  %s3507_s7 = inlined_call_operand.vmem [shape: f32[2,32,64], index: 7, kind: input, shape index: {}]   ;;  %s3508_s8 = inlined_call_operand.vmem [shape: f32[2,32,32], index: 8, kind: input, shape index: {}]   ;;  %s3509_s9 = inlined_call_operand.vmem [shape: f32[2,32,64], index: 9, kind: input, shape index: {}]   ;;  %s3510_s10 = inlined_call_operand.vmem [shape: f32[2,64,32], index: 10, kind: input, shape index: {}]   ;;  %s3511_s11 = inlined_call_operand.vmem [shape: f32[2,16,128], index: 11, kind: input, shape index: {}]   ;;  %s3512_s12 = inlined_call_operand.vmem [shape: f32[32,128], index: 12, kind: input, shape index: {}]   ;;  %s3513_s13 = inlined_call_operand.vmem [shape: f32[1,128], index: 13, kind: input, shape index: {}]   ;;  %s3514_s14 = inlined_call_operand.hbm [shape: f32[2,8,32], index: 14, kind: output, shape index: {0}]   ;;  %s3515_s15 = inlined_call_operand.hbm [shape: f32[2,8,128], index: 15, kind: output, shape index: {1}]  }
   0x1   :  { %3535 = sst [smem:[#allocation22_spill]] %s3500_s0 }
   0x2   :  { %3536 = sst [smem:[#allocation23_spill]] %s3504_s4 }
   0x3   :  { %3537 = sst [smem:[#allocation24_spill]] %s3505_s5 }
   0x4   :  { %3538 = sst [smem:[#allocation25_spill]] %s3506_s6 }
   0x5   :  { %3539 = sst [smem:[#allocation26_spill]] %s3507_s7 }
   0x6   :  { %3540 = sst [smem:[#allocation27_spill]] %s3511_s11 }
   0x7   :  { %3541 = sst [smem:[#allocation28_spill]] %s3512_s12 }
   0x8   :  { %3542 = sst [smem:[#allocation29_spill]] %s3513_s13 }
   0x9   :  { %3543 = sst [smem:[#allocation30_spill]] %s3514_s14 }
   0xa   :  { %3544 = sst [smem:[#allocation31_spill]] %s3515_s15 }
   0xb   :  { %21 = vsyncpa [#allocation3], 0 }
   0xc   :  { %23 = vsyncpa [#allocation3 + $0x1], 0 }
   0xd   :  { %24 = vsyncpa [#allocation5], 0 }
   0xe   :  { %26 = vsyncpa [#allocation5 + $0x1], 0  ;;  %s3069_s18 = smov 0   ;;  %s3071_s19 = smov 0  }
   0xf   :  { %s3073_s20 = smov 0   ;;  %s3075_s21 = smov 0  }
  0x10   :  { %s3077_s22 = smov 0   ;;  %s3079_s23 = smov 0  }
  0x11   :  { %s3081_s24 = smov 0   ;;  %s3083_s25 = smov 0  }
  0x12 LB: > { %3545 = sst [smem:[#allocation8_spill]] %s2945_s18  ;;  %s2419_s26 = sadd.s32 4294967295, %s2973_s25   ;;  %s2973_s25 = sphi %s3083_s25, %s32_s25   ;;  %s2969_s24 = sphi %s3081_s24, %s3589_s24   ;;  %s2965_s23 = sphi %s3079_s23, %s3588_s23   ;;  %s2961_s22 = sphi %s3077_s22, %s3587_s22   ;;  %s2957_s21 = sphi %s3075_s21, %s3586_s21   ;;  %s2953_s20 = sphi %s3073_s20, %s3585_s20   ;;  %s2949_s19 = sphi %s3071_s19, %s3584_s19   ;;  %s2945_s18 = sphi %s3069_s18, %s3583_s18  }
  0x13   : > { %3546 = sst [smem:[#allocation9_spill]] %s2949_s19  ;;  %s2420_s27 = sadd.s32 4294967294, %s2973_s25  }
  0x14   : > { %3547 = sst [smem:[#allocation10_spill]] %s2953_s20  ;;  %s41_s28 = sadd.s32 1, %s2965_s23 }
  0x15   : > { %3548 = sst [smem:[#allocation11_spill]] %s2957_s21  ;;  %p42_p0 = scmp.ge.s32.totalorder %s41_s28, 2 }
  0x16   : > { %3549 = sst [smem:[#allocation12_spill]] %s2961_s22  ;;  %s44_s29 = sadd.s32 1, %s2969_s24 }
  0x17   : > { %3550 = sst [smem:[#allocation13_spill]] %s2965_s23  ;;  %p415_p1 = scmp.ne.s32.totalorder %s2953_s20, %s2949_s19 }
  0x18   : > { %3551 = sst [smem:[#allocation14_spill]] %s2969_s24  ;;  %p416_p2 = scmp.eq.s32.totalorder %s2419_s26, 3 }
  0x19   : > { %3552 = sst [smem:[#allocation15_spill]] %s2973_s25  ;;  %s3591_s28 = smov (%p42_p0, %s41_s28), 0 }
  0x1a   : > { %3553 = sst [smem:[#allocation16_spill]] %s3591_s28  ;;  %s3593_s29 = smov (!%p42_p0, %s44_s29), %s2969_s24 }
  0x1b   : > { %p3118_p3 = por %p416_p2, %p415_p1  ;;  %p421_p4 = scmp.ne.s32.totalorder %s2949_s19, %s2945_s18 }
  0x1c   : > { %p46_p5 = scmp.ge.s32.totalorder %s3593_s29, 2  ;;  %p422_p6 = scmp.eq.s32.totalorder %s2420_s27, 3 }
  0x1d   : > { %s3554_s30 = scalar_select %p3118_p3, 1, 0 }
  0x1e   : > { %p2423_p7 = scmp.ge.s32.totalorder %s2973_s25, 1  ;;  %p564_p8 = scmp.lt.s32.totalorder %s2973_s25, 5 }
  0x1f   : > { %3555 = sst [smem:[#allocation17_spill]] %s3554_s30  ;;  %s3595_s29 = smov (%p46_p5, %s3593_s29), 0 }
  0x20   : > { %3556 = sst [smem:[#allocation18_spill]] %s3595_s29  ;;  %p3128_p9 = por %p422_p6, %p421_p4 }
  0x21   : > { %p565_p10 = pnand %p2423_p7, %p564_p8  ;;  %s402_s17 = ssub.s32 %s2969_s24, %s3595_s29 }
  0x22   : > { %s3557_s16 = scalar_select %p3128_p9, 1, 0 }
  0x23   : > { %s405_s26 = sadd.s32 1, %s2953_s20  ;;  %p403_p11 = scmp.eq.s32.totalorder %s402_s17, 0 }
  0x24   : > { %3558 = sst [smem:[#allocation19_spill]] %s3557_s16  ;;  %568 = sbr.rel (%p565_p10) target bundleno = 4838 (0x12e6), region = 76 }
  0x25   : > { %s3136_s28 = scalar_select %p403_p11, %s2953_s20, %s405_s26  }
  0x27   : > { %3559 = sst [smem:[#allocation20_spill]] %s3136_s28 }
  0x2b   : > { %s3139_s27 = sand.u32 1, %s2949_s19   ;;  %p668_p12 = scmp.lt.s32.totalorder %s2961_s22, 1 }
  0x2c   : > { %3560 = sst [smem:[#allocation21_spill]] %s3139_s27  ;;  %s2424_s23 = sshll.u32 %s3139_s27, 3 }
  0x2d   : > { %p684_p13 = scmp.lt.s32.totalorder %s2957_s21, 1  ;;  %s3561_s0 = sld [smem:[#allocation22_spill]] }
  0x2e   : > { %s669_s18 = scalar_select %p668_p12, %s2961_s22, 1 }
  0x2f   : > { %s685_s16 = scalar_select %p684_p13, %s2957_s21, 1 }
  0x30   : > { %s3146_s25 = sshll.u32 %s669_s18, 3  ;;  %s3562_s4 = sld [smem:[#allocation23_spill]] }
  0x31   : > { %s2475_s22 = sshll.u32 %s685_s16, 5  ;;  %s2481_s13 = sshll.u32 %s685_s16, 6 }
  0x32   : > { %s3563_s5 = sld [smem:[#allocation24_spill]]  ;;  %s3564_s6 = sld [smem:[#allocation25_spill]] }
  0x33   : > { %s671_s29 = scalar_lea.vmem %s3561_s0, %s3146_s25  ;;  %s3565_s7 = sld [smem:[#allocation26_spill]] }
  0x34   : > { %s3185_s12 = scalar_lea.vmem %s3508_s8, %s2475_s22  ;;  %s3190_s0 = scalar_lea.vmem %s3509_s9, %s2475_s22 }
  0x35   : > { %s3195_s24 = scalar_lea.vmem %s3510_s10, %s2481_s13  ;;  %s2482_s28 = sshll.u32 %s685_s16, 4 }
  0x36   : > { %s688_s26 = scalar_lea.vmem %s3562_s4, %s2475_s22  ;;  %s3566_s19 = sld [smem:[#allocation27_spill]] }
  0x37   : > { %s3204_s18 = scalar_lea.vmem [#allocation4], %s2424_s23  ;;  %s3567_s27 = sld [smem:[#allocation11_spill]] }
  0x38   : > { %s3170_s11 = scalar_lea.vmem %s3563_s5, %s2475_s22  ;;  %s3175_s15 = scalar_lea.vmem %s3564_s6, %s2475_s22 }
  0x39   : > { %s3180_s30 = scalar_lea.vmem %s3565_s7, %s2475_s22  ;;  %s3202_s7 = scalar_lea.vmem [#allocation2], %s2424_s23 }
  0x3c   : > { %s3200_s6 = scalar_lea.vmem %s3566_s19, %s2482_s28 }
  0x3d   : > { %p2446_p0 = scmp.ne.s32.totalorder %s3567_s27, 0 }
  0x3e   : > { %v728_v0 = vld [vmem:[%s671_s29] sm:$0xff] (!%p2446_p0)  ;;  %vm729_vm0 = vcmask (!%p2446_p0), 261120  }
  0x3f   : > { %727 = sbr.rel (%p2446_p0) target bundleno = 70 (0x46), region = 80  ;;  %730 = vst.msk [vmem:[%s3202_s7] sm:$0xff] (!%p2446_p0), %vm729_vm0, %v728_v0 }
  0x46 PF: > { %v737_v1 = vld [vmem:[%s688_s26] sm:$0xff]  ;;  %v738_v2 = vld [vmem:[%s688_s26 + $0x8] sm:$0xff]  ;;  %v739_v3 = vld [vmem:[%s688_s26 + $0x10] sm:$0xff]  ;;  %v2975_v4 = vmov 0.0|0.0   ;;  %vm2976_vm1 = vmmov 0   ;;  %v2977_v7 = vmov 0.0   ;;  %v741_v10 = vlaneseq  ;;  %s3568_s23 = scalar_lea.vmem %s3502_s2, %s3146_s25  ;;  %s3569_s21 = scalar_lea.vmem %s3501_s1, %s3146_s25 }
  0x47   : > { %2679 = vmatprep.subr.bf16.mxu1 %v2975_v4  ;;  %v2680_v5 = vpack.c.bf16 %v738_v2, %v737_v1  ;;  %v740_v6 = vld [vmem:[%s688_s26 + $0x18] sm:$0xff]  ;;  %2551 = vmatprep.mubr.msk.f32.mxu1 %vm2976_vm1, %v2977_v7  ;;  %v3216_v9 = vld [vmem:[%s3202_s7] sm:$0xff]  ;;  %vm745_vm2 = vcmask 261120   ;;  %s2978_s4 = smov 112   ;;  %s2979_s5 = smov 96   ;;  %vm826_vm3 = vcmask 130048  }
  0x48   : > { %2564 = vmatprep.subr.mxu0 %v2977_v7  ;;  %2566 = vmatprep.mubr.msk.f32.mxu0 %vm2976_vm1, %v2977_v7  ;;  %v2683_v8 = vpack.c.bf16 %v740_v6, %v739_v3  ;;  %v3223_v11 = vshrl.u32 %v741_v10, 7  ;;  %v3227_v13 = vld [vmem:[%s3200_s6] sm:$0xff]  ;;  %s2980_s13 = smov 80   ;;  %vm901_vm4 = vcmask 64512   ;;  %s2981_s29 = smov 48   ;;  %v820_v49 = vld [vmem:[%s3170_s11 + $0x8] sm:$0xff] }
  0x49   : > { %2681 = vmatpush3.bf16.msra.mxu1 %v2680_v5  ;;  %v733_v21 = vld [vmem:[%s3568_s23] sm:$0xff]  ;;  %s2982_s16 = smov 64   ;;  %v821_v50 = vld [vmem:[%s3170_s11 + $0x10] sm:$0xff]  ;;  %v822_v52 = vld [vmem:[%s3170_s11 + $0x18] sm:$0xff]  ;;  %s2983_s26 = smov 16   ;;  %vm1955_vm5 = vcmask 523264  }
  0x4a   : > { %2682 = vmatprep.subr.bf16.mxu1 %v2975_v4  ;;  %v743_v12 = vsub.s32 0, %v3223_v11  ;;  %v819_v48 = vld [vmem:[%s3170_s11] sm:$0xff]  ;;  %v2689_v53 = vpack.c.bf16 %v822_v52, %v821_v50  ;;  %v1161_v60 = vsub.s32 1, %v3223_v11  ;;  %s3570_s28 = scalar_lea.vmem %s3503_s3, %s3146_s25 }
  0x4b   : > { %v2686_v51 = vpack.c.bf16 %v820_v49, %v819_v48  ;;  %v734_v49 = vld [vmem:[%s3570_s28] sm:$0xff] }
  0x4c   : > { %v744_v14 = vrot.slane %v3227_v13, %v743_v12  ;;  %v1162_v61 = vrot.slane %v3227_v13, %v1161_v60 }
  0x4d   : > { %2684 = vmatpush3.bf16.msra.mxu1 %v2683_v8 }
  0x4e   : > { %2554 = vmatprep.subr.mxu1 %v2977_v7 }
  0x50   : > { %2552 = vmatmul.mubr.msk.f32.vlgmr.msra.gmra.mrb[0].mxu1 %vm745_vm2, %v3216_v9 }
  0x51   : > { %2556 = vmatprep.mubr.msk.f32.mxu1 %vm2976_vm1, %v2977_v7 }
 0x123   : > { %v815_v15 = vpop.f32.mrb[0].mxu1 }
 0x124   : > { %v816_v16 = vadd.f32 %v815_v15, %v744_v14  ;;  %v2553_v17 = vpop.f32.mrb[1].mxu1  ;;  %v1342_v14 = vld [vmem:[%s3180_s30] sm:$0xff]  ;;  %v1343_v15 = vld [vmem:[%s3180_s30 + $0x8] sm:$0xff] }
 0x125   : > { %v1262_v17 = vld [vmem:[%s3175_s15 + $0x8] sm:$0xff] }
 0x126   : > { %989 = vrot.lane.b32.xlu1 %v816_v16, %s2978_s4  ;;  %824 = vrot.lane.b32.xlu0 %v816_v16, %s2979_s5 }
 0x12a   : > { %991 = vrot.lane.b32.xlu0 %v816_v16, %s2980_s13 }
 0x198   : > { %v825_v18 = vpop.permute.xlu0 %824  ;;  %v990_v20 = vpop.permute.xlu1 %989 }
 0x199   : > { %2555 = vmatpush3.xpose.msk.msra.mxu1 %vm826_vm3, %v825_v18  ;;  %v1344_v18 = vld [vmem:[%s3180_s30 + $0x10] sm:$0xff] }
 0x19a   : > { %2559 = vmatprep.subr.mxu1 %v2977_v7 }
 0x19c   : > { %2557 = vmatmul.mubr.msk.f32.vlgmr.msra.gmra.mrb[2].mxu1 %vm826_vm3, %v816_v16  ;;  %v992_v19 = vpop.permute.xlu0 %991 }
 0x19d   : > { %2565 = vmatpush3.xpose.msk.msra.mxu0 %vm826_vm3, %v992_v19  ;;  %2561 = vmatprep.mubr.msk.f32.mxu1 %vm2976_vm1, %v2977_v7 }
 0x19e   : > { %2685 = vmatprep.subr.bf16.mxu0 %v2975_v4 }
 0x1a0   : > { %2567 = vmatmul.mubr.msk.f32.vlgmr.msra.gmra.mrb[0].mxu0 %vm826_vm3, %v990_v20  ;;  %v1345_v20 = vld [vmem:[%s3180_s30 + $0x18] sm:$0xff] }
 0x1a1   : > { %2582 = vmatprep.mubr.msk.f32.mxu0 %vm2976_vm1, %v2977_v7  ;;  %2687 = vmatpush3.bf16.msra.mxu0 %v2686_v51 }
 0x1a2   : > { %2688 = vmatprep.subr.bf16.mxu0 %v2975_v4 }
 0x1a5   : > { %2690 = vmatpush3.bf16.msra.mxu0 %v2689_v53 }
 0x1a6   : > { %2697 = vmatprep.subr.bf16.mxu0 %v2975_v4 }
 0x26f   : > { %v897_v22 = vpop.f32.mrb[2].mxu1 }
 0x270   : > { %v898_v23 = vadd.f32 %v897_v22, %v733_v21  ;;  %v2558_v24 = vpop.f32.mrb[3].mxu1  ;;  %v1263_v22 = vld [vmem:[%s3175_s15 + $0x10] sm:$0xff] }
 0x271   : > { %v732_v24 = vld [vmem:[%s3569_s21] sm:$0xff] }
 0x272   : > { %v902_v25 = vsel %vm901_vm4, %v898_v23, -inf }
 0x273   : > { %v1063_v26 = vpop.f32.mrb[0].mxu0  ;;  %903 = vmax.xlane.f32.xlu1 %v902_v25 }
 0x274   : > { %v1064_v27 = vadd.f32 %v1063_v26, %v733_v21  ;;  %v2568_v28 = vpop.f32.mrb[1].mxu0  ;;  %v2701_v21 = vpack.c.bf16 %v1345_v20, %v1344_v18  ;;  %v1423_v18 = vld [vmem:[%s3185_s12] sm:$0xff]  ;;  %v1425_v20 = vld [vmem:[%s3185_s12 + $0x10] sm:$0xff] }
 0x276   : > { %v1067_v29 = vsel %vm901_vm4, %v1064_v27, -inf }
 0x277   : > { %1068 = vmax.xlane.f32.xlu0 %v1067_v29  ;;  %v1253_v29 = vsub.s32 2, %v3223_v11 }
 0x300   : > { %v904_v30 = vpop.xlane.xlu1 %903 }
 0x301   : > { %v905_v31 = vsub.f32 %v898_v23, %v904_v30  ;;  %v1264_v23 = vld [vmem:[%s3175_s15 + $0x18] sm:$0xff]  ;;  %v1258_v30 = vsub.s32 3, %v3223_v11 }
 0x302   : > { %v2695_v25 = vpack.c.bf16 %v1264_v23, %v1263_v22  ;;  %v1426_v22 = vld [vmem:[%s3185_s12 + $0x18] sm:$0xff] }
 0x303   : > { %v906_v32 = vmul.f32 1.442695, %v905_v31  ;;  %v1254_v31 = vrot.slane %v3227_v13, %v1253_v29  ;;  %v2707_v23 = vpack.c.bf16 %v1426_v22, %v1425_v20 }
 0x304   : > { %v1069_v33 = vpop.xlane.xlu0 %1068 }
 0x305   : > { %2821 = vpow2.f32 %v906_v32  ;;  %v1070_v34 = vsub.f32 %v1064_v27, %v1069_v33 }
 0x307   : > { %v1071_v35 = vmul.f32 1.442695, %v1070_v34  ;;  %v1259_v34 = vrot.slane %v3227_v13, %v1258_v30 }
 0x309   : > { %2823 = vpow2.f32 %v1071_v35 }
 0x30f   : > { %v2822_v36 = vpop.eup %2821 }
 0x310   : > { %v908_v37 = vsel %vm901_vm4, %v2822_v36, 0.0 }
 0x311   : > { %909 = vadd.xlane.f32.xlu0 %v908_v37  ;;  %v1348_v37 = vsub.s32 5, %v3223_v11 }
 0x313   : > { %v2824_v38 = vpop.eup %2823 }
 0x314   : > { %v1073_v39 = vsel %vm901_vm4, %v2824_v38, 0.0 }
 0x315   : > { %1074 = vadd.xlane.f32.xlu1 %v1073_v39 }
 0x326   : > { %1078 = vrot.lane.b32.xlu1 %v816_v16, %s2981_s29 }
 0x327   : > { %913 = vrot.lane.b32.xlu0 %v816_v16, %s2982_s16  ;;  %v2698_v16 = vpack.c.bf16 %v1343_v15, %v1342_v14 }
 0x39e   : > { %v910_v40 = vpop.xlane.xlu0 %909 }
 0x39f   : > { %2825 = vrcp.f32 %v910_v40 }
 0x3a2   : > { %v914_v41 = vpop.permute.xlu0 %913  ;;  %v1075_v42 = vpop.xlane.xlu1 %1074 }
 0x3a3   : > { %2827 = vrcp.f32 %v1075_v42  ;;  %2560 = vmatpush3.msra.mxu1 %v914_v41 }
 0x3a4   : > { %2569 = vmatprep.subr.mxu1 %v2977_v7 }
 0x3a6   : > { %v1079_v45 = vpop.permute.xlu1 %1078 }
 0x3a9   : > { %v2826_v43 = vpop.eup %2825 }
 0x3aa   : > { %v912_v44 = vmul.f32 %v2826_v43, %v2822_v36  ;;  %v1267_v43 = vsub.s32 4, %v3223_v11 }
 0x3ac   : > { %2562 = vmatmul.mubr.msk.f32.vlgmr.msra.gmra.mrb[4].mxu1 %vm901_vm4, %v912_v44  ;;  %v1268_v44 = vrot.slane %v3227_v13, %v1267_v43 }
 0x3ad   : > { %v2828_v46 = vpop.eup %2827  ;;  %2570 = vmatpush3.msra.mxu1 %v1079_v45  ;;  %2571 = vmatprep.mubr.msk.f32.mxu1 %vm2976_vm1, %v2977_v7 }
 0x3ae   : > { %v1077_v47 = vmul.f32 %v2828_v46, %v2824_v38  ;;  %2691 = vmatprep.subr.bf16.mxu1 %v2975_v4  ;;  %v1349_v38 = vrot.slane %v3227_v13, %v1348_v37 }
 0x3b0   : > { %2572 = vmatmul.mubr.msk.f32.vlgmr.msra.gmra.mrb[6].mxu1 %vm901_vm4, %v1077_v47 }
 0x3b1   : > { %2593 = vmatprep.mubr.msk.f32.mxu1 %vm2976_vm1, %v2977_v7 }
 0x47f   : > { %v985_v54 = vpop.f32.mrb[4].mxu1 }
 0x480   : > { %v2563_v55 = vpop.f32.mrb[5].mxu1 }
 0x483   : > { %v1150_v56 = vpop.f32.mrb[6].mxu1 }
 0x484   : > { %1155 = vrot.lane.b32.xlu1 %v1150_v56, %s2983_s26  ;;  %v2573_v57 = vpop.f32.mrb[7].mxu1 }
 0x4f6   : > { %v1156_v58 = vpop.permute.xlu1 %1155 }
 0x4f7   : > { %v1158_v59 = vsel %vm826_vm3, %v985_v54, %v1156_v58 }
 0x4f8   : > { %2583 = vmatmul.mubr.msk.f32.vlgmr.msra.gmra.mrb[2].mxu0 %vm745_vm2, %v1158_v59 }
 0x4f9   : > { %2604 = vmatprep.mubr.msk.f32.mxu0 %vm2976_vm1, %v2977_v7  ;;  %2699 = vmatpush3.bf16.msra.mxu0 %v2698_v16 }
 0x4fa   : > { %2700 = vmatprep.subr.bf16.mxu0 %v2975_v4 }
 0x4fd   : > { %2702 = vmatpush3.bf16.msra.mxu0 %v2701_v21 }
 0x4fe   : > { %2617 = vmatprep.subr.mxu0 %v2977_v7 }
 0x500   : > { %2605 = vmatmul.mubr.msk.f32.vlgmr.msra.gmra.mrb[4].mxu0 %vm745_vm2, %v732_v24 }
 0x501   : > { %2619 = vmatprep.mubr.msk.f32.mxu0 %vm2976_vm1, %v2977_v7 }
 0x5cb   : > { %v1232_v62 = vpop.f32.mrb[2].mxu0 }
 0x5cc   : > { %v1233_v63 = vadd.f32 %v1232_v62, %v1162_v61  ;;  %v2584_v0 = vpop.f32.mrb[3].mxu0 }
 0x5ce   : > { %v1236_v1 = vadd.f32 %v1233_v63, %v3216_v9  ;;  %v1261_v9 = vld [vmem:[%s3175_s15] sm:$0xff] }
 0x5cf   : > { %v2692_v19 = vpack.c.bf16 %v1262_v17, %v1261_v9 }
 0x5d0   : > { %v1237_v2 = vsel %vm745_vm2, %v1236_v1, 0.0 }
 0x5d1   : > { %1238 = vadd.xlane.f32.xlu0 %v1237_v2  ;;  %2693 = vmatpush3.bf16.msra.mxu1 %v2692_v19  ;;  %v1424_v19 = vld [vmem:[%s3185_s12 + $0x8] sm:$0xff] }
 0x5d2   : > { %2694 = vmatprep.subr.bf16.mxu1 %v2975_v4  ;;  %v2704_v21 = vpack.c.bf16 %v1424_v19, %v1423_v18 }
 0x5d3   : > { %v1419_v39 = vpop.f32.mrb[4].mxu0 }
 0x5d4   : > { %v1420_v40 = vadd.f32 %v1419_v39, %v1349_v38  ;;  %v2606_v41 = vpop.f32.mrb[5].mxu0 }
 0x5d5   : > { %2696 = vmatpush3.bf16.msra.mxu1 %v2695_v25 }
 0x5d6   : > { %2607 = vmatprep.subr.mxu1 %v2977_v7 }
 0x5e7   : > { %1592 = vrot.lane.b32.xlu0 %v1420_v40, %s2978_s4 }
 0x65e   : > { %v1239_v3 = vpop.xlane.xlu0 %1238 }
 0x65f   : > { %v1241_v5 = vmul.f32 0.03125, %v1239_v3 }
 0x661   : > { %v1242_v6 = vsub.f32 %v1236_v1, %v1241_v5 }
 0x662   : > { %v1593_v42 = vpop.permute.xlu0 %1592 }
 0x663   : > { %v1243_v8 = vmul.f32 %v1242_v6, %v1242_v6  ;;  %2618 = vmatpush3.xpose.msk.msra.mxu0 %vm826_vm3, %v1593_v42 }
 0x664   : > { %2703 = vmatprep.subr.bf16.mxu0 %v2975_v4 }
 0x665   : > { %v1244_v10 = vsel %vm745_vm2, %v1243_v8, 0.0 }
 0x666   : > { %1245 = vadd.xlane.f32.xlu1 %v1244_v10 }
 0x6f3   : > { %v1246_v26 = vpop.xlane.xlu1 %1245 }
 0x6f4   : > { %v1247_v27 = vmul.f32 0.03125, %v1246_v26 }
 0x6f6   : > { %v1248_v28 = vadd.f32 1e-05, %v1247_v27 }
 0x6f8   : > { %2829 = vrsqrt.f32 %v1248_v28 }
 0x702   : > { %v2830_v32 = vpop.eup %2829 }
 0x703   : > { %v1250_v33 = vmul.f32 %v2830_v32, %v1242_v6  ;;  %v1762_v32 = vsub.s32 6, %v3223_v11 }
 0x705   : > { %v1255_v35 = vmul.f32 %v1254_v31, %v1250_v33  ;;  %v1763_v33 = vrot.slane %v3227_v13, %v1762_v32 }
 0x707   : > { %v3308_v36 = vadd.f32 %v1259_v34, %v1255_v35 }
 0x709   : > { %2594 = vmatmul.mubr.msk.f32.vlgmr.msra.gmra.mrb[8].mxu1 %vm745_vm2, %v3308_v36 }
 0x70a   : > { %2609 = vmatprep.mubr.msk.f32.mxu1 %vm2976_vm1, %v2977_v7  ;;  %2608 = vmatpush3.xpose.msk.msra.mxu1 %vm826_vm3, %v1420_v40 }
 0x70b   : > { %2612 = vmatprep.subr.mxu1 %v2977_v7 }
 0x7dc   : > { %v1338_v45 = vpop.f32.mrb[8].mxu1 }
 0x7dd   : > { %v1339_v46 = vadd.f32 %v1338_v45, %v1268_v44  ;;  %v2595_v47 = vpop.f32.mrb[9].mxu1  ;;  %v1861_v45 = vld [vmem:[%s3190_s0] sm:$0xff] }
 0x7df   : > { %1590 = vrot.lane.b32.xlu1 %v1339_v46, %s2978_s4  ;;  %2610 = vmatmul.mubr.msk.f32.vlgmr.msra.gmra.mrb[10].mxu1 %vm826_vm3, %v1339_v46  ;;  %v1862_v46 = vld [vmem:[%s3190_s0 + $0x8] sm:$0xff] }
 0x7e0   : > { %2614 = vmatprep.mubr.msk.f32.mxu1 %vm2976_vm1, %v2977_v7  ;;  %v2710_v47 = vpack.c.bf16 %v1862_v46, %v1861_v45 }
 0x851   : > { %v1591_v48 = vpop.permute.xlu1 %1590 }
 0x852   : > { %2620 = vmatmul.mubr.msk.f32.vlgmr.msra.gmra.mrb[6].mxu0 %vm826_vm3, %v1591_v48  ;;  %v1864_v48 = vld [vmem:[%s3190_s0 + $0x18] sm:$0xff] }
 0x853   : > { %2635 = vmatprep.mubr.msk.f32.mxu0 %vm2976_vm1, %v2977_v7  ;;  %2705 = vmatpush3.bf16.msra.mxu0 %v2704_v21 }
 0x854   : > { %2706 = vmatprep.subr.bf16.mxu0 %v2975_v4 }
 0x857   : > { %2708 = vmatpush3.bf16.msra.mxu0 %v2707_v23 }
 0x858   : > { %2715 = vmatprep.subr.bf16.mxu0 %v2975_v4 }
 0x8b2   : > { %v1499_v50 = vpop.f32.mrb[10].mxu1 }
 0x8b3   : > { %v1500_v51 = vadd.f32 %v1499_v50, %v734_v49  ;;  %v2611_v52 = vpop.f32.mrb[11].mxu1  ;;  %v1943_v50 = vld [vmem:[%s3195_s24] sm:$0xff] }
 0x8b4   : > { %v1945_v52 = vld [vmem:[%s3195_s24 + $0x10] sm:$0xff] }
 0x8b5   : > { %v1503_v53 = vsel %vm901_vm4, %v1500_v51, -inf }
 0x8b6   : > { %1504 = vmax.xlane.f32.xlu0 %v1503_v53 }
 0x925   : > { %v1664_v54 = vpop.f32.mrb[6].mxu0 }
 0x926   : > { %v1665_v55 = vadd.f32 %v1664_v54, %v734_v49  ;;  %v2621_v56 = vpop.f32.mrb[7].mxu0  ;;  %v1946_v54 = vld [vmem:[%s3195_s24 + $0x18] sm:$0xff] }
 0x927   : > { %v1947_v56 = vld [vmem:[%s3195_s24 + $0x20] sm:$0xff] }
 0x928   : > { %v1668_v57 = vsel %vm901_vm4, %v1665_v55, -inf }
 0x929   : > { %1669 = vmax.xlane.f32.xlu1 %v1668_v57  ;;  %v1948_v57 = vld [vmem:[%s3195_s24 + $0x28] sm:$0xff] }
 0x93a   : > { %1514 = vrot.lane.b32.xlu1 %v1420_v40, %s2979_s5 }
 0x943   : > { %v1505_v58 = vpop.xlane.xlu0 %1504 }
 0x944   : > { %v1506_v59 = vsub.f32 %v1500_v51, %v1505_v58  ;;  %v1944_v51 = vld [vmem:[%s3195_s24 + $0x8] sm:$0xff]  ;;  %v2722_v58 = vpack.c.bf16 %v1948_v57, %v1947_v56 }
 0x945   : > { %v2716_v53 = vpack.c.bf16 %v1944_v51, %v1943_v50 }
 0x946   : > { %v1507_v61 = vmul.f32 1.442695, %v1506_v59 }
 0x948   : > { %2831 = vpow2.f32 %v1507_v61 }
 0x952   : > { %v2832_v62 = vpop.eup %2831 }
 0x953   : > { %v1509_v63 = vsel %vm901_vm4, %v2832_v62, 0.0 }
 0x954   : > { %1510 = vadd.xlane.f32.xlu0 %v1509_v63  ;;  %v1853_v63 = vsub.s32 7, %v3223_v11 }
 0x9b6   : > { %v1670_v0 = vpop.xlane.xlu1 %1669 }
 0x9b7   : > { %v1671_v1 = vsub.f32 %v1665_v55, %v1670_v0  ;;  %v2719_v55 = vpack.c.bf16 %v1946_v54, %v1945_v52  ;;  %v736_v0 = vld [vmem:[%s3200_s6 + $0x8] sm:$0xff]  ;;  %s3571_s6 = sld [smem:[#allocation11_spill]] }
 0x9b9   : > { %v1672_v2 = vmul.f32 1.442695, %v1671_v1  ;;  %v1854_v1 = vrot.slane %v3227_v13, %v1853_v63 }
 0x9ba   : > { %v1515_v3 = vpop.permute.xlu1 %1514 }
 0x9bb   : > { %2833 = vpow2.f32 %v1672_v2  ;;  %2613 = vmatpush3.msra.mxu1 %v1515_v3  ;;  %v1859_v3 = vrot.slane %v736_v0, %v743_v12  ;;  %v1954_v12 = vrot.slane %v736_v0, %v1253_v29  ;;  %v2046_v29 = vrot.slane %v736_v0, %v1258_v30 }
 0x9bc   : > { %2622 = vmatprep.subr.mxu1 %v2977_v7 }
 0x9bd   : > { %p2466_p1 = scmp.ne.s32.totalorder %s3571_s6, 1 }
 0x9be   : > { %vm2985_vm6 = vmmov (!%p2466_p1), 0   ;;  %s3573_s22 = sld [smem:[#allocation29_spill]] (!%p2466_p1) }
 0x9c5   : > { %v2834_v5 = vpop.eup %2833 }
 0x9c6   : > { %v1674_v6 = vsel %vm901_vm4, %v2834_v5, 0.0 }
 0x9c7   : > { %1675 = vadd.xlane.f32.xlu0 %v1674_v6 }
 0x9dd   : > { %1679 = vrot.lane.b32.xlu0 %v1420_v40, %s2980_s13 }
 0x9e1   : > { %v1511_v8 = vpop.xlane.xlu0 %1510 }
 0x9e2   : > { %2835 = vrcp.f32 %v1511_v8 }
 0x9ec   : > { %v2836_v10 = vpop.eup %2835 }
 0x9ed   : > { %v1513_v14 = vmul.f32 %v2836_v10, %v2832_v62  ;;  %v1949_v10 = vld [vmem:[%s3195_s24 + $0x30] sm:$0xff] }
 0x9ef   : > { %2615 = vmatmul.mubr.msk.f32.vlgmr.msra.gmra.mrb[12].mxu1 %vm901_vm4, %v1513_v14 }
 0x9f0   : > { %2624 = vmatprep.mubr.msk.f32.mxu1 %vm2976_vm1, %v2977_v7 }
 0xa54   : > { %v1676_v15 = vpop.xlane.xlu0 %1675 }
 0xa55   : > { %2837 = vrcp.f32 %v1676_v15  ;;  %v1868_v15 = vrot.slane %v736_v0, %v1161_v60 }
 0xa58   : > { %v1680_v16 = vpop.permute.xlu0 %1679 }
 0xa59   : > { %2623 = vmatpush3.msra.mxu1 %v1680_v16 }
 0xa5a   : > { %2709 = vmatprep.subr.bf16.mxu1 %v2975_v4 }
 0xa5f   : > { %v2838_v9 = vpop.eup %2837 }
 0xa60   : > { %v1678_v17 = vmul.f32 %v2838_v9, %v2834_v5 }
 0xa62   : > { %2625 = vmatmul.mubr.msk.f32.vlgmr.msra.gmra.mrb[14].mxu1 %vm901_vm4, %v1678_v17 }
 0xa63   : > { %2646 = vmatprep.mubr.msk.f32.mxu1 %vm2976_vm1, %v2977_v7  ;;  %2711 = vmatpush3.bf16.msra.mxu1 %v2710_v47 }
 0xa64   : > { %2712 = vmatprep.subr.bf16.mxu1 %v2975_v4 }
 0xac2   : > { %v1586_v24 = vpop.f32.mrb[12].mxu1 }
 0xac3   : > { %v2616_v25 = vpop.f32.mrb[13].mxu1 }
 0xb35   : > { %v1751_v26 = vpop.f32.mrb[14].mxu1 }
 0xb36   : > { %1756 = vrot.lane.b32.xlu1 %v1751_v26, %s2983_s26  ;;  %v2626_v27 = vpop.f32.mrb[15].mxu1 }
 0xba8   : > { %v1757_v28 = vpop.permute.xlu1 %1756 }
 0xba9   : > { %v1759_v31 = vsel %vm826_vm3, %v1586_v24, %v1757_v28 }
 0xbaa   : > { %2636 = vmatmul.mubr.msk.f32.vlgmr.msra.gmra.mrb[8].mxu0 %vm745_vm2, %v1759_v31 }
 0xbab   : > { %2665 = vmatprep.mubr.msk.f32.mxu0 %vm2976_vm1, %v2977_v7  ;;  %2717 = vmatpush3.bf16.msra.mxu0 %v2716_v53 }
 0xbac   : > { %2718 = vmatprep.subr.bf16.mxu0 %v2975_v4 }
 0xbaf   : > { %2720 = vmatpush3.bf16.msra.mxu0 %v2719_v55 }
 0xbb0   : > { %2721 = vmatprep.subr.bf16.mxu0 %v2975_v4 }
 0xbb3   : > { %2723 = vmatpush3.bf16.msra.mxu0 %v2722_v58 }
 0xbb4   : > { %2724 = vmatprep.subr.bf16.mxu0 %v2975_v4  ;;  %v1950_v4 = vld [vmem:[%s3195_s24 + $0x38] sm:$0xff] }
 0xbb5   : > { %v2725_v14 = vpack.c.bf16 %v1950_v4, %v1949_v10 }
 0xbb7   : > { %2726 = vmatpush3.bf16.msra.mxu0 %v2725_v14 }
 0xc7d   : > { %v1833_v34 = vpop.f32.mrb[8].mxu0 }
 0xc7e   : > { %v1834_v35 = vadd.f32 %v1833_v34, %v1763_v33  ;;  %v2637_v37 = vpop.f32.mrb[9].mxu0  ;;  %v2051_v33 = vrot.slane %v736_v0, %v1267_v43  ;;  %v2984_v43 = vmov (!%p2466_p1), 0.0|0.0  }
 0xc7f   : > { %2727 = vmatprep.subr.bf16.mxu0 (!%p2466_p1), %v2984_v43 }
 0xc80   : > { %v1837_v38 = vadd.f32 %v1834_v35, %v3308_v36  ;;  %v1863_v36 = vld [vmem:[%s3190_s0 + $0x10] sm:$0xff]  ;;  %s3572_s0 = sld [smem:[#allocation28_spill]] (!%p2466_p1) }
 0xc81   : > { %v2713_v49 = vpack.c.bf16 %v1864_v48, %v1863_v36 }
 0xc82   : > { %v1838_v39 = vsel %vm745_vm2, %v1837_v38, 0.0 }
 0xc83   : > { %1839 = vadd.xlane.f32.xlu1 %v1838_v39  ;;  %2714 = vmatpush3.bf16.msra.mxu1 %v2713_v49 }
 0xc86   : > { %v2059_v30 = vld [vmem:[%s3572_s0 + $0x8] sm:$0xff] (!%p2466_p1)  ;;  %v2060_v11 = vld [vmem:[%s3572_s0 + $0x10] sm:$0xff] (!%p2466_p1) }
 0xd10   : > { %v1840_v40 = vpop.xlane.xlu1 %1839 }
 0xd11   : > { %v1841_v41 = vmul.f32 0.03125, %v1840_v40  ;;  %v2061_v40 = vld [vmem:[%s3572_s0 + $0x18] sm:$0xff] (!%p2466_p1) }
 0xd13   : > { %v1842_v7 = vsub.f32 %v1837_v38, %v1841_v41  ;;  %v2058_v38 = vld [vmem:[%s3572_s0] sm:$0xff] (!%p2466_p1)  ;;  %v2986_v41 = vmov (!%p2466_p1), 0.0  }
 0xd14   : > { %v2728_v39 = vpack.c.bf16 (!%p2466_p1), %v2059_v30, %v2058_v38 }
 0xd15   : > { %v1843_v42 = vmul.f32 %v1842_v7, %v1842_v7 }
 0xd17   : > { %v1844_v44 = vsel %vm745_vm2, %v1843_v42, 0.0  ;;  %v2467_v42 = vld [vmem:[%s3573_s22] ss:$0 sm:$0xff] (!%p2466_p1) }
 0xd18   : > { %1845 = vadd.xlane.f32.xlu0 %v1844_v44 }
 0xda5   : > { %v1846_v59 = vpop.xlane.xlu0 %1845 }
 0xda6   : > { %v1847_v61 = vmul.f32 0.03125, %v1846_v59 }
 0xda8   : > { %v1848_v62 = vadd.f32 1e-05, %v1847_v61 }
 0xdaa   : > { %2839 = vrsqrt.f32 %v1848_v62 }
 0xdb4   : > { %v2840_v2 = vpop.eup %2839 }
 0xdb5   : > { %v1850_v5 = vmul.f32 %v2840_v2, %v1842_v7  ;;  %v2731_v7 = vpack.c.bf16 (!%p2466_p1), %v2061_v40, %v2060_v11 }
 0xdb7   : > { %v1855_v6 = vmul.f32 %v1854_v1, %v1850_v5 }
 0xdb9   : > { %v1860_v8 = vadd.f32 %v1859_v3, %v1855_v6 }
 0xdbb   : > { %2647 = vmatmul.mubr.msk.f32.vlgmr.msra.gmra.mrb[16].mxu1 %vm745_vm2, %v1860_v8 }
 0xe8e   : > { %v1938_v16 = vpop.f32.mrb[16].mxu1 }
 0xe8f   : > { %v1939_v9 = vadd.f32 %v1938_v16, %v1868_v15  ;;  %v2648_v17 = vpop.f32.mrb[17].mxu1 }
 0xe91   : > { %v1942_v13 = vmax.f32 %v1939_v9, 0.0 }
 0xe93   : > { %2666 = vmatmul.mubr.msk.f32.vlgmr.msra.gmra.mrb[10].mxu0 %vm1955_vm5, %v1942_v13 }
 0xe94   : > { %2676 = vmatprep.mubr.msk.f32.mxu0 (!%p2466_p1), %vm2985_vm6, %v2986_v41  ;;  %2729 = vmatpush3.bf16.msra.mxu0 (!%p2466_p1), %v2728_v39 }
 0xe95   : > { %2730 = vmatprep.subr.bf16.mxu0 (!%p2466_p1), %v2984_v43 }
 0xe98   : > { %2732 = vmatpush3.bf16.msra.mxu0 (!%p2466_p1), %v2731_v7 }
 0xf66   : > { %v2025_v18 = vpop.f32.mrb[10].mxu0 }
 0xf67   : > { %v2026_v19 = vadd.f32 %v2025_v18, %v1954_v12  ;;  %v2667_v20 = vpop.f32.mrb[11].mxu0 }
 0xf69   : > { %v2029_v21 = vadd.f32 %v2026_v19, %v1860_v8 }
 0xf6b   : > { %v2030_v22 = vsel %vm745_vm2, %v2029_v21, 0.0 }
 0xf6c   : > { %2031 = vadd.xlane.f32.xlu0 %v2030_v22 }
 0xff9   : > { %v2032_v23 = vpop.xlane.xlu0 %2031 }
 0xffa   : > { %v2033_v24 = vmul.f32 0.03125, %v2032_v23 }
 0xffc   : > { %v2034_v60 = vsub.f32 %v2029_v21, %v2033_v24 }
 0xffe   : > { %v2035_v25 = vmul.f32 %v2034_v60, %v2034_v60 }
0x1000   : > { %v2036_v26 = vsel %vm745_vm2, %v2035_v25, 0.0 }
0x1001   : > { %2037 = vadd.xlane.f32.xlu1 %v2036_v26 }
0x108e   : > { %v2038_v27 = vpop.xlane.xlu1 %2037 }
0x108f   : > { %v2039_v28 = vmul.f32 0.03125, %v2038_v27 }
0x1091   : > { %v2040_v31 = vadd.f32 1e-05, %v2039_v28 }
0x1093   : > { %2841 = vrsqrt.f32 %v2040_v31 }
0x109d   : > { %v2842_v32 = vpop.eup %2841 }
0x109e   : > { %v2042_v34 = vmul.f32 %v2842_v32, %v2034_v60  ;;  %2057 = sbr.rel (%p2466_p1) target bundleno = 4789 (0x12b5), region = 84 }
0x10a0   : > { %v2047_v35 = vmul.f32 %v2046_v29, %v2042_v34 }
0x10a2   : > { %v2052_v37 = vadd.f32 %v2051_v33, %v2047_v35 }
0x10a4   : > { %2053 = vst.msk [vmem:[%s3202_s7] sm:$0xff] %vm745_vm2, %v2052_v37  ;;  %2677 = vmatmul.mubr.msk.f32.vlgmr.msra.gmra.mrb[0].mxu0 (!%p2466_p1), %vm745_vm2, %v2052_v37 }
0x1177   : > { %v2138_v44 = vpop.f32.mrb[0].mxu0 }
0x1178   : > { %v2139_v45 = vadd.f32 %v2467_v42, %v2138_v44  ;;  %v2678_v46 = vpop.f32.mrb[1].mxu0 }
0x117a   : > { %2142 = vmax.xlane.f32.xlu0 %v2139_v45 }
0x1207   : > { %v2143_v47 = vpop.xlane.xlu0 %2142 }
0x1208   : > { %v2144_v36 = vsub.f32 %v2139_v45, %v2143_v47 }
0x120a   : > { %v2145_v48 = vmul.f32 1.442695, %v2144_v36 }
0x120c   : > { %2843 = vpow2.f32 %v2145_v48 }
0x1216   : > { %v2844_v49 = vpop.eup %2843 }
0x1217   : > { %2147 = vadd.xlane.f32.xlu0 %v2844_v49 }
0x12a4   : > { %v2148_v50 = vpop.xlane.xlu0 %2147 }
0x12a5   : > { %2845 = vlog2.f32 %v2148_v50 }
0x12af   : > { %v2846_v51 = vpop.eup %2845 }
0x12b0   : > { %v2150_v52 = vmul.f32 0.6931472, %v2846_v51 }
0x12b2   : > { %v2151_v53 = vsub.f32 %v2144_v36, %v2150_v52 }
0x12b4   : > { %2152 = vst [vmem:[%s3204_s18] sm:$0xff] %v2151_v53 }
0x12b5 PF: > { %s3574_s23 = sld [smem:[#allocation12_spill]]  ;;  %s3575_s29 = sld [smem:[#allocation21_spill]] }
0x12b6   : > { %s3577_s21 = sld [smem:[#allocation30_spill]]  ;;  %s2172_s28 = sshll.u32 %s3202_s7, 4  ;;  %s2173_s28 = int_to_ptr.vmem [resolvable:$true] %s2172_s28 }
0x12b7   : > { %s2847_s25 = scalar_lea.vmem %s2173_s28, 128  ;;  %s2987_s12 = smov [#allocation2]  }
0x12b8   : > { %p2848_p2 = scmp.ne.s32.totalorder %s2173_s28, %s2847_s25  ;;  %s2851_s24 = sshll.u32 %s2987_s12, 4  ;;  %s2852_s24 = int_to_ptr.vmem [resolvable:$false] %s2851_s24 }
0x12b9   : > { %s2853_s20 = scalar_lea.vmem %s2852_s24, 256  ;;  %p2854_p6 = scmp.lt.s32.totalorder %s2173_s28, %s2852_s24 }
0x12ba   : > { %p2849_p4 = pnand %p2848_p2, %p3118_p3  ;;  %p2855_p7 = scmp.lt.s32.totalorder %s2853_s20, %s2847_s25 }
0x12bb   : > { %s2471_s26 = sshll.u32 %s3574_s23, 7  ;;  %s2154_s6 = scalar_lea.sflag [#allocation3], %s3575_s29 }
0x12bc   : > { %s3578_s15 = smov %s3577_s21  ;;  %s3425_s30 = scalar_lea.hbm %s3577_s21, %s2471_s26 }
0x12bd   : > { %p2850_p5 = pneg %p2849_p4  ;;  %p2856_p8 = por %p2855_p7, %p2854_p6 }
0x12bf   : > { %p2857_p10 = pnand %p2856_p8, %p2850_p5 }
0x12c1   : > { %2860 = shalt.err (!%p2857_p10)
}
0x12c2   : > { %s2861_s7 = scalar_lea.hbm %s3425_s30, 128  ;;  %s2865_s4 = scalar_lea.hbm %s3578_s15, 256 }
0x12c3   : > { %p2862_p11 = scmp.ne.s32.totalorder %s3425_s30, %s2861_s7  ;;  %p2866_p0 = scmp.lt.u32.totalorder %s3425_s30, %s3578_s15 }
0x12c4   : > { %p2867_p1 = scmp.lt.u32.totalorder %s2865_s4, %s2861_s7  ;;  %p2869_p4 = scmp.lt.u32.totalorder %s2861_s7, %s3425_s30 }
0x12c5   : > { %p2863_p12 = pnand %p2862_p11, %p3118_p3 }
0x12c6   : > { %p2868_p2 = por %p2867_p1, %p2866_p0 }
0x12c7   : > { %p2864_p13 = pneg %p2863_p12 }
0x12c8   : > { %p2870_p5 = por %p2869_p4, %p2868_p2 }
0x12ca   : > { %p2871_p6 = pnand %p2870_p5, %p2864_p13 }
0x12cc   : > { %2874 = shalt.err (!%p2871_p6)
}
0x12cd   : > { %2733 = dma.vmem_to_hbm [thread:$0]  (%p3118_p3), %s2173_s28, 128, %s3425_s30, %s2154_s6  }
0x12ce   : > { %s3579_s11 = sld [smem:[#allocation31_spill]]  ;;  %s2185_s21 = sshll.u32 %s3204_s18, 4  ;;  %s2186_s21 = int_to_ptr.vmem [resolvable:$true] %s2185_s21 }
0x12cf   : > { %s2159_s25 = scalar_lea.sflag [#allocation5], %s3575_s29  ;;  %s2875_s12 = scalar_lea.vmem %s2186_s21, 128 }
0x12d0   : > { %p2876_p7 = scmp.ne.s32.totalorder %s2186_s21, %s2875_s12  ;;  %s2988_s24 = smov [#allocation4]  }
0x12d1   : > { %s2879_s20 = sshll.u32 %s2988_s24, 4  ;;  %s2880_s20 = int_to_ptr.vmem [resolvable:$false] %s2879_s20 }
0x12d2   : > { %p2877_p8 = pnand %p2876_p7, %p3118_p3  ;;  %s2881_s7 = scalar_lea.vmem %s2880_s20, 256 }
0x12d3   : > { %p2882_p11 = scmp.lt.s32.totalorder %s2186_s21, %s2880_s20  ;;  %p2883_p12 = scmp.lt.s32.totalorder %s2881_s7, %s2875_s12 }
0x12d4   : > { %s3451_s17 = scalar_lea.hbm %s3579_s11, %s2471_s26  ;;  %p2878_p10 = pneg %p2877_p8 }
0x12d5   : > { %p2884_p13 = por %p2883_p12, %p2882_p11 }
0x12d7   : > { %p2885_p0 = pnand %p2884_p13, %p2878_p10 }
0x12d9   : > { %2888 = shalt.err (!%p2885_p0)
}
0x12da   : > { %s2889_s18 = scalar_lea.hbm %s3451_s17, 128  ;;  %s2893_s26 = scalar_lea.hbm %s3579_s11, 256 }
0x12db   : > { %p2890_p1 = scmp.ne.s32.totalorder %s3451_s17, %s2889_s18  ;;  %p2894_p5 = scmp.lt.u32.totalorder %s3451_s17, %s3579_s11 }
0x12dc   : > { %p2895_p6 = scmp.lt.u32.totalorder %s2893_s26, %s2889_s18  ;;  %p2897_p8 = scmp.lt.u32.totalorder %s2889_s18, %s3451_s17 }
0x12dd   : > { %p2891_p2 = pnand %p2890_p1, %p3118_p3 }
0x12de   : > { %p2896_p7 = por %p2895_p6, %p2894_p5 }
0x12df   : > { %p2892_p4 = pneg %p2891_p2 }
0x12e0   : > { %p2898_p10 = por %p2897_p8, %p2896_p7 }
0x12e2   : > { %p2899_p11 = pnand %p2898_p10, %p2892_p4 }
0x12e4   : > { %2902 = shalt.err (!%p2899_p11)
}
0x12e5   : > { %2734 = dma.vmem_to_hbm [thread:$0]  (%p3118_p3), %s2186_s21, 128, %s3451_s17, %s2159_s25  }
0x12e6 PF: > { %s3580_s6 = sld [smem:[#allocation15_spill]]  ;;  %s3581_s19 = sld [smem:[#allocation8_spill]] }
0x12ec   : > { %p2744_p12 = scmp.ge.s32.totalorder %s3580_s6, 2  ;;  %s2197_s4 = sand.u32 1, %s3581_s19  }
0x12ed   : > { %s2198_s5 = scalar_lea.sflag [#allocation3], %s2197_s4 }
0x12ee   : > { %p2738_p13 = pnand %p2744_p12, %p3128_p9 }
0x12f0   : > { %2936 = dma.done.wait (!%p2738_p13), %s2198_s5, 128  }
0x12f1   : > { %2938 = vsyncadd (!%p2738_p13), %s2198_s5, 4294967168  ;;  %s2207_s13 = scalar_lea.sflag [#allocation5], %s2197_s4 }
0x12f2   : > { %2940 = dma.done.wait (!%p2738_p13), %s2207_s13, 128  }
0x12f3   : > { %2942 = vsyncadd (!%p2738_p13), %s2207_s13, 4294967168  ;;  %s32_s25 = sadd.s32 1, %s3580_s6   ;;  %s3583_s18 = sld [smem:[#allocation9_spill]] }
0x12f4   : > { %p29_p0 = scmp.ge.s32.totalorder %s32_s25, 6   ;;  %s3584_s19 = sld [smem:[#allocation10_spill]] }
0x12f5   : > { %s3585_s20 = sld [smem:[#allocation20_spill]]  ;;  %s3586_s21 = sld [smem:[#allocation13_spill]] }
0x12f6   : > { %s3587_s22 = sld [smem:[#allocation14_spill]]  ;;  %s3588_s23 = sld [smem:[#allocation16_spill]] }
0x12f7   : > { %s3589_s24 = sld [smem:[#allocation18_spill]]  ;;  %31 = sbr.rel (!%p29_p0) target bundleno = 18 (0x12), region = 169 }
0x12fe   :  { %2212 = vsyncpa [#allocation3], 1 }
0x12ff   :  { %2214 = vsyncpa [#allocation3 + $0x1], 1 }
0x1300   :  { %2215 = vsyncpa [#allocation5], 1 }
0x1301   :  { %2217 = vsyncpa [#allocation5 + $0x1], 1 }

</bundles_post_ra>
